<compile_context>
chip_gen: v7x
topology: tpu7x:2x2x1
jax: 0.10.0
libtpu: 0.0.40
codegen_flags: <defaults>
</compile_context>

<pallas_src>
import functools

import jax
import jax.numpy as jnp
import numpy as np
from jax.experimental import pallas as pl
from jax.experimental.pallas import tpu as pltpu

DOT_DTYPE = jnp.bfloat16   # dtype of every MXU dot input stream
ACT_DTYPE = jnp.bfloat16   # HBM storage dtype of conv outputs (stats stay f32)


# ----------------------------- in-kernel helpers ----------------------------

def _elu(x):
    # ELU(alpha=1). exp(x)-1 (not expm1) to avoid depending on an expm1 Mosaic
    # lowering; the precision delta is far below the bf16-stream noise floor.
    return jnp.where(x > 0.0, x, jnp.exp(jnp.minimum(x, 0.0)) - 1.0)


def _shift_lanes(x, amt):
    """y[..., i] = x[..., (i + amt) mod n] for a static python int `amt`."""
    n = x.shape[-1]
    amt = amt % n
    if amt == 0:
        return x
    return jnp.concatenate([x[..., amt:], x[..., :amt]], axis=-1)


def _conv_epilogue(acc, b, o_ref, st_ref):
    """bias add + bf16 store + per-tile BN partial sums ([1, Cout, 2])."""
    u = acc + b                                             # [Cout, TM] f32
    o_ref[...] = u.astype(o_ref.dtype)
    s1 = jnp.sum(u, axis=1, keepdims=True)                  # [Cout, 1]
    s2 = jnp.sum(u * u, axis=1, keepdims=True)              # [Cout, 1]
    st_ref[...] = jnp.concatenate([s1, s2], axis=1)[None]   # [1, Cout, 2]


# ------------------------------- Pallas kernels -----------------------------

def _conv_patch_kernel(p_ref, w_ref, b_ref, o_ref, st_ref):
    """Down conv (stride 2): one MXU matmul over a pre-built bf16 patch tile."""
    acc = jnp.dot(w_ref[...], p_ref[...], preferred_element_type=jnp.float32)
    _conv_epilogue(acc, b_ref[...], o_ref, st_ref)


def _conv_dilated_kernel(u_ref, s_ref, t_ref, w_ref, b_ref, r_ref, c_ref,
                         o_ref, st_ref, *, dil, Ho, Wo):
    """Fused (BN-apply + ELU once) -> 3x3 dilated conv with in-VMEM tap
    construction (lane shifts + boundary masks == exact zero padding)."""
    # (1) previous layer's BatchNorm scale/shift + ELU, once per element.
    act = _elu(u_ref[...].astype(jnp.float32) * s_ref[...] + t_ref[...])
    act = act.astype(DOT_DTYPE)                              # [Cin, TM]

    row = r_ref[...]                                         # [1, TM] int32 (row in sample)
    col = c_ref[...]                                         # [1, TM] int32 (col in sample)

    acc = None
    for kh in range(3):
        dr = (kh - 1) * dil
        row_ok = jnp.logical_and(row + dr >= 0, row + dr < Ho)
        for kw in range(3):
            dc = (kw - 1) * dil
            col_ok = jnp.logical_and(col + dc >= 0, col + dc < Wo)
            valid = jnp.where(jnp.logical_and(row_ok, col_ok),
                              jnp.float32(1), jnp.float32(0)).astype(DOT_DTYPE)
            # tap[m] = act[m + dr*Wo + dc] inside the image, 0 on the border.
            tap = _shift_lanes(act, dr * Wo + dc) * valid    # [Cin, TM]
            d = jnp.dot(w_ref[kh * 3 + kw], tap,
                        preferred_element_type=jnp.float32)  # [Cout, TM] f32
            acc = d if acc is None else acc + d
    _conv_epilogue(acc, b_ref[...], o_ref, st_ref)


def _residual_nchw_kernel(o1_ref, u_ref, s_ref, t_ref, out_ref):
    # out = ELU(out1 + BN_last(u_last)), written as an [1, Cout, TW] NCHW block.
    x = o1_ref[...].astype(jnp.float32)
    y = u_ref[...].astype(jnp.float32) * s_ref[...] + t_ref[...]
    out_ref[...] = _elu(x + y)[None].astype(out_ref.dtype)


def _residual_cm_kernel(o1_ref, u_ref, s_ref, t_ref, out_ref):
    x = o1_ref[...].astype(jnp.float32)
    y = u_ref[...].astype(jnp.float32) * s_ref[...] + t_ref[...]
    out_ref[...] = _elu(x + y).astype(out_ref.dtype)


# ------------------------- budgets / tiling / params ------------------------

def _vmem_limit_and_budget():
    """Generation-aware VMEM limits (v7x: 64 MiB physical, v5e/v6e: 128 MiB)."""
    try:
        cap = int(pltpu.get_tpu_info().vmem_capacity_bytes)
    except Exception:
        cap = 64 * 1024 * 1024
    vmem_limit = min(cap // 2, 48 * 1024 * 1024)   # 32 MiB on v7x, 48 MiB on v5e/v6e
    tile_budget = min(cap // 6, 16 * 1024 * 1024)  # per-grid-step working-set cap
    return vmem_limit, tile_budget


def _make_cp(n_axes, vmem_limit):
    return pltpu.CompilerParams(
        dimension_semantics=("parallel",) * n_axes,
        vmem_limit_bytes=int(vmem_limit))


def _pick_tm(N, HoWo, per_lane_bytes, budget_bytes):
    """Largest TM = spb*HoWo (spb | N, whole samples per tile) that fits the
    VMEM budget and keeps lanes dense (TM % 128 == 0 or TM == M)."""
    cands = [s for s in range(N, 0, -1)
             if N % s == 0 and ((s * HoWo) % 128 == 0 or s == N)]
    for s in cands:
        if s * HoWo * per_lane_bytes <= budget_bytes:
            return s * HoWo
    return cands[-1] * HoWo


def _pick_tw(HoWo, max_lanes=8192):
    if HoWo <= max_lanes:
        return HoWo
    for tw in range(max_lanes - max_lanes % 128, 127, -128):
        if HoWo % tw == 0:
            return tw
    return HoWo


# ------------------------------ Pallas wrappers ------------------------------

def conv_down_pallas(patches, w_mat, bias, *, tm, vmem_limit):
    """patches [9*Cin, M] bf16, w_mat [Cout, 9*Cin] bf16 -> (u bf16, stats f32)."""
    K9, M = patches.shape
    Cout = w_mat.shape[0]
    G = M // tm
    return pl.pallas_call(
        _conv_patch_kernel,
        grid=(G,),
        in_specs=[pl.BlockSpec((K9, tm), lambda i: (0, i)),
                  pl.BlockSpec((Cout, K9), lambda i: (0, 0)),
                  pl.BlockSpec((Cout, 1), lambda i: (0, 0))],
        out_specs=(pl.BlockSpec((Cout, tm), lambda i: (0, i)),
                   pl.BlockSpec((1, Cout, 2), lambda i: (i, 0, 0))),
        out_shape=(jax.ShapeDtypeStruct((Cout, M), ACT_DTYPE),
                   jax.ShapeDtypeStruct((G, Cout, 2), jnp.float32)),
        compiler_params=_make_cp(1, vmem_limit),
    )(patches, w_mat, bias.reshape(Cout, 1).astype(jnp.float32))


def conv_dilated_pallas(u_prev, scale, shift, w_taps, bias, row_idx, col_idx,
                        *, dil, Ho, Wo, tm, vmem_limit):
    """Fused BN+ELU + dilated conv.  u_prev [Cin, M] bf16, w_taps [9, Cout, Cin]."""
    Cin, M = u_prev.shape
    Cout = w_taps.shape[1]
    G = M // tm
    kern = functools.partial(_conv_dilated_kernel, dil=dil, Ho=Ho, Wo=Wo)
    return pl.pallas_call(
        kern,
        grid=(G,),
        in_specs=[pl.BlockSpec((Cin, tm), lambda i: (0, i)),
                  pl.BlockSpec((Cin, 1), lambda i: (0, 0)),
                  pl.BlockSpec((Cin, 1), lambda i: (0, 0)),
                  pl.BlockSpec((9, Cout, Cin), lambda i: (0, 0, 0)),
                  pl.BlockSpec((Cout, 1), lambda i: (0, 0)),
                  pl.BlockSpec((1, tm), lambda i: (0, i)),
                  pl.BlockSpec((1, tm), lambda i: (0, i))],
        out_specs=(pl.BlockSpec((Cout, tm), lambda i: (0, i)),
                   pl.BlockSpec((1, Cout, 2), lambda i: (i, 0, 0))),
        out_shape=(jax.ShapeDtypeStruct((Cout, M), ACT_DTYPE),
                   jax.ShapeDtypeStruct((G, Cout, 2), jnp.float32)),
        compiler_params=_make_cp(1, vmem_limit),
    )(u_prev, scale.reshape(Cin, 1), shift.reshape(Cin, 1),
      w_taps, bias.reshape(Cout, 1).astype(jnp.float32), row_idx, col_idx)


def residual_nchw_pallas(out1, u_last, scale, shift, *, N, HoWo, tw, vmem_limit):
    """out[n, c, p] = ELU(out1 + BN_last(u_last)), emitted directly in NCHW."""
    Cout, M = out1.shape
    J = HoWo // tw
    return pl.pallas_call(
        _residual_nchw_kernel,
        grid=(N, J),
        in_specs=[pl.BlockSpec((Cout, tw), lambda n, j: (0, n * J + j)),
                  pl.BlockSpec((Cout, tw), lambda n, j: (0, n * J + j)),
                  pl.BlockSpec((Cout, 1), lambda n, j: (0, 0)),
                  pl.BlockSpec((Cout, 1), lambda n, j: (0, 0))],
        out_specs=pl.BlockSpec((1, Cout, tw), lambda n, j: (n, 0, j)),
        out_shape=jax.ShapeDtypeStruct((N, Cout, HoWo), jnp.float32),
        compiler_params=_make_cp(2, vmem_limit),
    )(out1, u_last, scale.reshape(Cout, 1), shift.reshape(Cout, 1))


def residual_cm_pallas(out1, u_last, scale, shift, *, tm, vmem_limit):
    """Fallback ([Cout, M] layout) when Ho*Wo is not 128-lane aligned."""
    Cout, M = out1.shape
    G = M // tm
    return pl.pallas_call(
        _residual_cm_kernel,
        grid=(G,),
        in_specs=[pl.BlockSpec((Cout, tm), lambda i: (0, i)),
                  pl.BlockSpec((Cout, tm), lambda i: (0, i)),
                  pl.BlockSpec((Cout, 1), lambda i: (0, 0)),
                  pl.BlockSpec((Cout, 1), lambda i: (0, 0))],
        out_specs=pl.BlockSpec((Cout, tm), lambda i: (0, i)),
        out_shape=jax.ShapeDtypeStruct((Cout, M), jnp.float32),
        compiler_params=_make_cp(1, vmem_limit),
    )(out1, u_last, scale.reshape(Cout, 1), shift.reshape(Cout, 1))


# --------------------------- layout / glue helpers --------------------------

def _im2col_s2(x_cnhw, *, pad=1):
    """Stride-2 3x3 im2col for the down conv only.  [C,N,H,W] -> [9*C, M]."""
    C, N, H, W = x_cnhw.shape
    Ho = (H + 2 * pad - 3) // 2 + 1
    Wo = (W + 2 * pad - 3) // 2 + 1
    xp = jnp.pad(x_cnhw, ((0, 0), (0, 0), (pad, pad), (pad, pad)))
    cols = []
    for kh in range(3):
        for kw in range(3):
            sl = xp[:, :, kh:kh + 2 * (Ho - 1) + 1:2, kw:kw + 2 * (Wo - 1) + 1:2]
            cols.append(sl.reshape(C, N * Ho * Wo))
    return jnp.concatenate(cols, axis=0), Ho, Wo


def _weight_mat(w_hwio):
    # [3,3,Cin,Cout] -> [Cout, 9*Cin], column order (kh, kw, cin) = im2col rows.
    Cout = w_hwio.shape[-1]
    return jnp.transpose(w_hwio, (3, 0, 1, 2)).reshape(Cout, -1)


def _weight_taps(w_hwio):
    # [3,3,Cin,Cout] -> [9, Cout, Cin], tap index = kh*3+kw.
    Cin, Cout = w_hwio.shape[2], w_hwio.shape[3]
    return jnp.transpose(w_hwio, (0, 1, 3, 2)).reshape(9, Cout, Cin)


def _bn_coeffs(stats, gamma, beta, m, eps=1e-5):
    """Training-mode BatchNorm (batch stats, biased variance) from per-tile sums."""
    s1 = jnp.sum(stats[:, :, 0], axis=0)   # [C]
    s2 = jnp.sum(stats[:, :, 1], axis=0)   # [C]
    mean = s1 / m
    # one-pass variance, clamped; fine at f32 for O(1)-scale activations.
    # TODO(synk): compensated/Welford cross-tile merge if |mean| >> std ever holds.
    var = jnp.maximum(s2 / m - mean * mean, 0.0)
    scale = gamma * jax.lax.rsqrt(var + eps)
    shift = beta - mean * scale
    return scale, shift


# ------------------------------ full forward --------------------------------

def down_transition_forward(x_nchw, params, *, layer, dilation, samples_per_tile=None):
    N, Cin, H, W = x_nchw.shape
    Cout = params["b_down"].shape[0]
    vmem_limit, tile_budget = _vmem_limit_and_budget()

    # ---- self.down: conv3x3 stride-2 (one wrapper-side bf16 im2col, done once)
    x_c = jnp.transpose(x_nchw, (1, 0, 2, 3)).astype(DOT_DTYPE)   # [Cin, N, H, W]
    patches, Ho, Wo = _im2col_s2(x_c, pad=1)                      # [9*Cin, M] bf16
    HoWo = Ho * Wo
    M = N * HoWo

    # crude per-lane VMEM estimate: double-buffered HBM streams + temporaries.
    per_lane = (2 * (2 * Cout + 2 * Cout + 8)      # act-in + act-out + idx streams
                + 2 * (2 * 9 * Cin)                # down-conv patch stream
                + 2 * 2 * Cout + 4 * 2 * Cout)     # act/tap bf16 + f32 accumulator
    if samples_per_tile is not None:
        assert N % samples_per_tile == 0
        tm = samples_per_tile * HoWo
    else:
        tm = _pick_tm(N, HoWo, per_lane, tile_budget)
    assert M % tm == 0

    out1, st = conv_down_pallas(patches,
                                _weight_mat(params["w_down"]).astype(DOT_DTYPE),
                                params["b_down"], tm=tm, vmem_limit=vmem_limit)
    scale, shift = _bn_coeffs(st, params["bn0_gamma"], params["bn0_beta"], M)

    # per-position (row, col) within a sample, for in-kernel zero-pad masking.
    if layer > 0:
        p = jnp.arange(HoWo, dtype=jnp.int32)
        row_idx = jnp.tile(p // Wo, N).reshape(1, M)
        col_idx = jnp.tile(p % Wo, N).reshape(1, M)

    # self.conv = Sequential(ELU, Conv(dil), BN) * layer; BN-apply + ELU fused
    # (once per element) into each conv kernel, taps built in VMEM.
    u_prev = out1
    for i in range(layer):
        u_prev, st = conv_dilated_pallas(
            u_prev, scale, shift,
            _weight_taps(params[f"w_{i}"]).astype(DOT_DTYPE), params[f"b_{i}"],
            row_idx, col_idx, dil=dilation, Ho=Ho, Wo=Wo, tm=tm,
            vmem_limit=vmem_limit)
        scale, shift = _bn_coeffs(st, params[f"bn{i + 1}_gamma"],
                                  params[f"bn{i + 1}_beta"], M)

    # ---- out = ELU(out1 + BN_last(u_last)), emitted directly in NCHW layout.
    if HoWo % 128 == 0:
        tw = _pick_tw(HoWo)
        out = residual_nchw_pallas(out1, u_prev, scale, shift,
                                   N=N, HoWo=HoWo, tw=tw, vmem_limit=vmem_limit)
        return out.reshape(N, Cout, Ho, Wo)
    out = residual_cm_pallas(out1, u_prev, scale, shift, tm=tm, vmem_limit=vmem_limit)
    return jnp.transpose(out.reshape(Cout, N, Ho, Wo), (1, 0, 2, 3))


# --------------------------- pure-JAX reference ------------------------------

def _conv_ref(x, w, b, stride, pad, dilation):
    y = jax.lax.conv_general_dilated(
        x, w, window_strides=(stride, stride),
        padding=((pad, pad), (pad, pad)),
        rhs_dilation=(dilation, dilation),
        dimension_numbers=("NHWC", "HWIO", "NHWC"))
    return y + b


def _bn_ref(x, gamma, beta, eps=1e-5):
    mean = jnp.mean(x, axis=(0, 1, 2), keepdims=True)
    var = jnp.mean((x - mean) ** 2, axis=(0, 1, 2), keepdims=True)
    return (x - mean) * jax.lax.rsqrt(var + eps) * gamma + beta


def down_transition_ref(x_nchw, params, *, layer, dilation):
    x = jnp.transpose(x_nchw, (0, 2, 3, 1))
    out1 = _conv_ref(x, params["w_down"], params["b_down"], 2, 1, 1)
    t = _bn_ref(out1, params["bn0_gamma"], params["bn0_beta"])
    for i in range(layer):
        t = jax.nn.elu(t)
        t = _conv_ref(t, params[f"w_{i}"], params[f"b_{i}"], 1, dilation, dilation)
        t = _bn_ref(t, params[f"bn{i + 1}_gamma"], params[f"bn{i + 1}_beta"])
    out = jax.nn.elu(out1 + t)
    return jnp.transpose(out, (0, 3, 1, 2))


# ------------------------------- parameters ----------------------------------

def init_params(key, inchan, outchan, layer):
    params = {}
    ks = jax.random.split(key, 4 + 4 * layer)
    i = 0
    params["w_down"] = 0.1 * jax.random.normal(ks[i], (3, 3, inchan, outchan), jnp.float32); i += 1
    params["b_down"] = 0.1 * jax.random.normal(ks[i], (outchan,), jnp.float32); i += 1
    params["bn0_gamma"] = 1.0 + 0.1 * jax.random.normal(ks[i], (outchan,), jnp.float32); i += 1
    params["bn0_beta"] = 0.1 * jax.random.normal(ks[i], (outchan,), jnp.float32); i += 1
    for l in range(layer):
        params[f"w_{l}"] = 0.1 * jax.random.normal(ks[i], (3, 3, outchan, outchan), jnp.float32); i += 1
        params[f"b_{l}"] = 0.1 * jax.random.normal(ks[i], (outchan,), jnp.float32); i += 1
        params[f"bn{l + 1}_gamma"] = 1.0 + 0.1 * jax.random.normal(ks[i], (outchan,), jnp.float32); i += 1
        params[f"bn{l + 1}_beta"] = 0.1 * jax.random.normal(ks[i], (outchan,), jnp.float32); i += 1
    return params


# ----------------------------------- main ------------------------------------

if __name__ == "__main__":
    def run_case(N, H, W, inchan, outchan, layer, dilation_, samples_per_tile=None):
        key = jax.random.PRNGKey(0)
        kx, kp = jax.random.split(key)
        x = jax.random.normal(kx, (N, inchan, H, W), jnp.float32)   # NCHW, like PyTorch
        params = init_params(kp, inchan, outchan, layer)

        fwd = jax.jit(functools.partial(down_transition_forward, layer=layer,
                                        dilation=dilation_,
                                        samples_per_tile=samples_per_tile))
        out = jax.block_until_ready(fwd(x, params))
        ref = jax.block_until_ready(
            down_transition_ref(x, params, layer=layer, dilation=dilation_))

        assert out.shape == ref.shape == (N, outchan, H // 2, W // 2), out.shape
        # bf16 activation/weight streams (f32 accumulation) -> relaxed tolerance.
        np.testing.assert_allclose(np.asarray(out), np.asarray(ref),
                                   rtol=5e-2, atol=5e-2)

    # Single-tile case, and a forced multi-tile case (2 tiles) that exercises
    # the cross-tile BatchNorm statistics accumulation.
    run_case(N=2, H=16, W=32, inchan=4, outchan=8, layer=2, dilation_=2)
    run_case(N=2, H=32, W=32, inchan=4, outchan=8, layer=2, dilation_=2,
             samples_per_tile=1)
    print("KERNEL_OK")
</pallas_src>

<mosaic_0001>
module attributes {stable_mosaic.version = 11 : i64} {
  func.func @_conv_patch_kernel(%arg0: i32, %arg1: memref<36x256xbf16, #tpu.memory_space<vmem>>, %arg2: memref<8x36xbf16, #tpu.memory_space<vmem>>, %arg3: memref<8x1xf32, #tpu.memory_space<vmem>>, %arg4: memref<8x256xbf16, #tpu.memory_space<vmem>>, %arg5: memref<1x8x2xf32, #tpu.memory_space<vmem>>) attributes {dimension_semantics = [#tpu.dimension_semantics<parallel>], iteration_bounds = array<i64: 1>, scalar_prefetch = 0 : i64, scratch_operands = 0 : i64, tpu.core_type = #tpu.core_type<tc>, window_params = [{transform_indices = @transform_0, window_bounds = array<i64: 36, 256>}, {pipeline_mode = #tpu.pipeline_mode<synchronous>, transform_indices = @transform_1, window_bounds = array<i64: 8, 36>}, {pipeline_mode = #tpu.pipeline_mode<synchronous>, transform_indices = @transform_2, window_bounds = array<i64: 8, 1>}, {transform_indices = @transform_3, window_bounds = array<i64: 8, 256>}, {transform_indices = @transform_4, window_bounds = array<i64: 1, 8, 2>}]} {
    %c0 = arith.constant 0 : index
    %c0_0 = arith.constant 0 : index
    %0 = vector.load %arg2[%c0, %c0_0] : memref<8x36xbf16, #tpu.memory_space<vmem>>, vector<8x36xbf16>
    %c0_1 = arith.constant 0 : index
    %c0_2 = arith.constant 0 : index
    %1 = vector.load %arg1[%c0_1, %c0_2] : memref<36x256xbf16, #tpu.memory_space<vmem>>, vector<36x256xbf16>
    %cst = arith.constant dense<0.000000e+00> : vector<8x256xf32>
    %2 = tpu.matmul %0, %1, %cst {dimension_numbers = #tpu.dot_dimension_numbers<[1], [0], [0], [1], [0, 0, 1, 1], [], []>} : vector<8x36xbf16>, vector<36x256xbf16>, vector<8x256xf32> -> vector<8x256xf32>
    %c0_3 = arith.constant 0 : index
    %c0_4 = arith.constant 0 : index
    %3 = vector.load %arg3[%c0_3, %c0_4] : memref<8x1xf32, #tpu.memory_space<vmem>>, vector<8x1xf32>
    %4 = vector.broadcast %3 : vector<8x1xf32> to vector<8x256xf32>
    %5 = arith.addf %2, %4 : vector<8x256xf32>
    %6 = arith.truncf %5 : vector<8x256xf32> to vector<8x256xbf16>
    %c0_5 = arith.constant 0 : index
    %c0_6 = arith.constant 0 : index
    %7 = vector.load %arg4[%c0_5, %c0_6] : memref<8x256xbf16, #tpu.memory_space<vmem>>, vector<8x256xbf16>
    tpu.vector_store %arg4[%c0_5, %c0_6], %6 {strides = array<i32>} : memref<8x256xbf16, #tpu.memory_space<vmem>>, vector<8x256xbf16>,
    %cst_7 = arith.constant dense<0.000000e+00> : vector<8xf32>
    %8 = vector.multi_reduction <add>, %5, %cst_7 [1] : vector<8x256xf32> to vector<8xf32>
    %9 = vector.shape_cast %8 : vector<8xf32> to vector<8x1xf32>
    %10 = arith.mulf %5, %5 : vector<8x256xf32>
    %cst_8 = arith.constant dense<0.000000e+00> : vector<8xf32>
    %11 = vector.multi_reduction <add>, %10, %cst_8 [1] : vector<8x256xf32> to vector<8xf32>
    %12 = vector.shape_cast %11 : vector<8xf32> to vector<8x1xf32>
    %13 = tpu.concatenate %9, %12 in 1 : vector<8x1xf32>, vector<8x1xf32> -> vector<8x2xf32>
    %14 = vector.shape_cast %13 : vector<8x2xf32> to vector<1x8x2xf32>
    %c0_9 = arith.constant 0 : index
    %c0_10 = arith.constant 0 : index
    %c0_11 = arith.constant 0 : index
    %15 = vector.load %arg5[%c0_9, %c0_10, %c0_11] : memref<1x8x2xf32, #tpu.memory_space<vmem>>, vector<1x8x2xf32>
    tpu.vector_store %arg5[%c0_9, %c0_10, %c0_11], %14 {strides = array<i32>} : memref<1x8x2xf32, #tpu.memory_space<vmem>>, vector<1x8x2xf32>,
    return
  }
  func.func @transform_0(%arg0: i32) -> (i32, i32) {
    %c0_i32 = arith.constant 0 : i32
    %c0_i32_0 = arith.constant 0 : i32
    return %c0_i32, %arg0 : i32, i32
  }
  func.func @transform_1(%arg0: i32) -> (i32, i32) {
    %c0_i32 = arith.constant 0 : i32
    %c0_i32_0 = arith.constant 0 : i32
    %c0_i32_1 = arith.constant 0 : i32
    return %c0_i32, %c0_i32_0 : i32, i32
  }
  func.func @transform_2(%arg0: i32) -> (i32, i32) {
    %c0_i32 = arith.constant 0 : i32
    %c0_i32_0 = arith.constant 0 : i32
    %c0_i32_1 = arith.constant 0 : i32
    return %c0_i32, %c0_i32_0 : i32, i32
  }
  func.func @transform_3(%arg0: i32) -> (i32, i32) {
    %c0_i32 = arith.constant 0 : i32
    %c0_i32_0 = arith.constant 0 : i32
    return %c0_i32, %arg0 : i32, i32
  }
  func.func @transform_4(%arg0: i32) -> (i32, i32, i32) {
    %c0_i32 = arith.constant 0 : i32
    %c0_i32_0 = arith.constant 0 : i32
    %c0_i32_1 = arith.constant 0 : i32
    return %arg0, %c0_i32, %c0_i32_0 : i32, i32, i32
  }
}

module attributes {stable_mosaic.version = 11 : i64} {
  func.func @_residual_nchw_kernel(%arg0: i32, %arg1: i32, %arg2: memref<8x128xbf16, #tpu.memory_space<vmem>>, %arg3: memref<8x128xbf16, #tpu.memory_space<vmem>>, %arg4: memref<8x1xf32, #tpu.memory_space<vmem>>, %arg5: memref<8x1xf32, #tpu.memory_space<vmem>>, %arg6: memref<1x8x128xf32, #tpu.memory_space<vmem>>) attributes {dimension_semantics = [#tpu.dimension_semantics<parallel>, #tpu.dimension_semantics<parallel>], iteration_bounds = array<i64: 2, 1>, scalar_prefetch = 0 : i64, scratch_operands = 0 : i64, tpu.core_type = #tpu.core_type<tc>, window_params = [{transform_indices = @transform_0, window_bounds = array<i64: 8, 128>}, {transform_indices = @transform_1, window_bounds = array<i64: 8, 128>}, {pipeline_mode = #tpu.pipeline_mode<synchronous>, transform_indices = @transform_2, window_bounds = array<i64: 8, 1>}, {pipeline_mode = #tpu.pipeline_mode<synchronous>, transform_indices = @transform_3, window_bounds = array<i64: 8, 1>}, {transform_indices = @transform_4, window_bounds = array<i64: 1, 8, 128>}]} {
    %c0 = arith.constant 0 : index
    %c0_0 = arith.constant 0 : index
    %0 = vector.load %arg2[%c0, %c0_0] : memref<8x128xbf16, #tpu.memory_space<vmem>>, vector<8x128xbf16>
    %1 = arith.extf %0 : vector<8x128xbf16> to vector<8x128xf32>
    %c0_1 = arith.constant 0 : index
    %c0_2 = arith.constant 0 : index
    %2 = vector.load %arg3[%c0_1, %c0_2] : memref<8x128xbf16, #tpu.memory_space<vmem>>, vector<8x128xbf16>
    %3 = arith.extf %2 : vector<8x128xbf16> to vector<8x128xf32>
    %c0_3 = arith.constant 0 : index
    %c0_4 = arith.constant 0 : index
    %4 = vector.load %arg4[%c0_3, %c0_4] : memref<8x1xf32, #tpu.memory_space<vmem>>, vector<8x1xf32>
    %5 = vector.broadcast %4 : vector<8x1xf32> to vector<8x128xf32>
    %6 = arith.mulf %3, %5 : vector<8x128xf32>
    %c0_5 = arith.constant 0 : index
    %c0_6 = arith.constant 0 : index
    %7 = vector.load %arg5[%c0_5, %c0_6] : memref<8x1xf32, #tpu.memory_space<vmem>>, vector<8x1xf32>
    %8 = vector.broadcast %7 : vector<8x1xf32> to vector<8x128xf32>
    %9 = arith.addf %6, %8 : vector<8x128xf32>
    %10 = arith.addf %1, %9 : vector<8x128xf32>
    %cst = arith.constant 0.000000e+00 : f32
    %11 = vector.broadcast %cst : f32 to vector<8x128xf32>
    %12 = arith.cmpf ogt, %10, %11 : vector<8x128xf32>
    %cst_7 = arith.constant 0.000000e+00 : f32
    %13 = vector.broadcast %cst_7 : f32 to vector<8x128xf32>
    %14 = arith.minimumf %10, %13 : vector<8x128xf32>
    %15 = math.exp %14 : vector<8x128xf32>
    %cst_8 = arith.constant 1.000000e+00 : f32
    %16 = vector.broadcast %cst_8 : f32 to vector<8x128xf32>
    %17 = arith.subf %15, %16 : vector<8x128xf32>
    %18 = arith.select %12, %10, %17 : vector<8x128xi1>, vector<8x128xf32>
    %19 = vector.shape_cast %18 : vector<8x128xf32> to vector<1x8x128xf32>
    %c0_9 = arith.constant 0 : index
    %c0_10 = arith.constant 0 : index
    %c0_11 = arith.constant 0 : index
    %20 = vector.load %arg6[%c0_9, %c0_10, %c0_11] : memref<1x8x128xf32, #tpu.memory_space<vmem>>, vector<1x8x128xf32>
    tpu.vector_store %arg6[%c0_9, %c0_10, %c0_11], %19 {strides = array<i32>} : memref<1x8x128xf32, #tpu.memory_space<vmem>>, vector<1x8x128xf32>,
    return
  }
  func.func @transform_0(%arg0: i32, %arg1: i32) -> (i32, i32) {
    %c1_i32 = arith.constant 1 : i32
    %0 = arith.muli %arg0, %c1_i32 : i32
    %1 = arith.addi %0, %arg1 : i32
    %c0_i32 = arith.constant 0 : i32
    %c0_i32_0 = arith.constant 0 : i32
    return %c0_i32, %1 : i32, i32
  }
  func.func @transform_1(%arg0: i32, %arg1: i32) -> (i32, i32) {
    %c1_i32 = arith.constant 1 : i32
    %0 = arith.muli %arg0, %c1_i32 : i32
    %1 = arith.addi %0, %arg1 : i32
    %c0_i32 = arith.constant 0 : i32
    %c0_i32_0 = arith.constant 0 : i32
    return %c0_i32, %1 : i32, i32
  }
  func.func @transform_2(%arg0: i32, %arg1: i32) -> (i32, i32) {
    %c0_i32 = arith.constant 0 : i32
    %c0_i32_0 = arith.constant 0 : i32
    %c0_i32_1 = arith.constant 0 : i32
    return %c0_i32, %c0_i32_0 : i32, i32
  }
  func.func @transform_3(%arg0: i32, %arg1: i32) -> (i32, i32) {
    %c0_i32 = arith.constant 0 : i32
    %c0_i32_0 = arith.constant 0 : i32
    %c0_i32_1 = arith.constant 0 : i32
    return %c0_i32, %c0_i32_0 : i32, i32
  }
  func.func @transform_4(%arg0: i32, %arg1: i32) -> (i32, i32, i32) {
    %c0_i32 = arith.constant 0 : i32
    %c0_i32_0 = arith.constant 0 : i32
    return %arg0, %c0_i32, %arg1 : i32, i32, i32
  }
}

module attributes {stable_mosaic.version = 11 : i64} {
  func.func @_conv_dilated_kernel(%arg0: i32, %arg1: memref<8x256xbf16, #tpu.memory_space<vmem>>, %arg2: memref<8x1xf32, #tpu.memory_space<vmem>>, %arg3: memref<8x1xf32, #tpu.memory_space<vmem>>, %arg4: memref<9x8x8xbf16, #tpu.memory_space<vmem>>, %arg5: memref<8x1xf32, #tpu.memory_space<vmem>>, %arg6: memref<1x256xi32, #tpu.memory_space<vmem>>, %arg7: memref<1x256xi32, #tpu.memory_space<vmem>>, %arg8: memref<8x256xbf16, #tpu.memory_space<vmem>>, %arg9: memref<1x8x2xf32, #tpu.memory_space<vmem>>) attributes {dimension_semantics = [#tpu.dimension_semantics<parallel>], iteration_bounds = array<i64: 1>, scalar_prefetch = 0 : i64, scratch_operands = 0 : i64, tpu.core_type = #tpu.core_type<tc>, window_params = [{transform_indices = @transform_0, window_bounds = array<i64: 8, 256>}, {pipeline_mode = #tpu.pipeline_mode<synchronous>, transform_indices = @transform_1, window_bounds = array<i64: 8, 1>}, {pipeline_mode = #tpu.pipeline_mode<synchronous>, transform_indices = @transform_2, window_bounds = array<i64: 8, 1>}, {pipeline_mode = #tpu.pipeline_mode<synchronous>, transform_indices = @transform_3, window_bounds = array<i64: 9, 8, 8>}, {pipeline_mode = #tpu.pipeline_mode<synchronous>, transform_indices = @transform_4, window_bounds = array<i64: 8, 1>}, {transform_indices = @transform_5, window_bounds = array<i64: 1, 256>}, {transform_indices = @transform_6, window_bounds = array<i64: 1, 256>}, {transform_indices = @transform_7, window_bounds = array<i64: 8, 256>}, {transform_indices = @transform_8, window_bounds = array<i64: 1, 8, 2>}]} {
    %c0 = arith.constant 0 : index
    %c0_0 = arith.constant 0 : index
    %0 = vector.load %arg1[%c0, %c0_0] : memref<8x256xbf16, #tpu.memory_space<vmem>>, vector<8x256xbf16>
    %1 = arith.extf %0 : vector<8x256xbf16> to vector<8x256xf32>
    %c0_1 = arith.constant 0 : index
    %c0_2 = arith.constant 0 : index
    %2 = vector.load %arg2[%c0_1, %c0_2] : memref<8x1xf32, #tpu.memory_space<vmem>>, vector<8x1xf32>
    %3 = vector.broadcast %2 : vector<8x1xf32> to vector<8x256xf32>
    %4 = arith.mulf %1, %3 : vector<8x256xf32>
    %c0_3 = arith.constant 0 : index
    %c0_4 = arith.constant 0 : index
    %5 = vector.load %arg3[%c0_3, %c0_4] : memref<8x1xf32, #tpu.memory_space<vmem>>, vector<8x1xf32>
    %6 = vector.broadcast %5 : vector<8x1xf32> to vector<8x256xf32>
    %7 = arith.addf %4, %6 : vector<8x256xf32>
    %cst = arith.constant 0.000000e+00 : f32
    %8 = vector.broadcast %cst : f32 to vector<8x256xf32>
    %9 = arith.cmpf ogt, %7, %8 : vector<8x256xf32>
    %cst_5 = arith.constant 0.000000e+00 : f32
    %10 = vector.broadcast %cst_5 : f32 to vector<8x256xf32>
    %11 = arith.minimumf %7, %10 : vector<8x256xf32>
    %12 = math.exp %11 : vector<8x256xf32>
    %cst_6 = arith.constant 1.000000e+00 : f32
    %13 = vector.broadcast %cst_6 : f32 to vector<8x256xf32>
    %14 = arith.subf %12, %13 : vector<8x256xf32>
    %15 = arith.select %9, %7, %14 : vector<8x256xi1>, vector<8x256xf32>
    %16 = arith.truncf %15 : vector<8x256xf32> to vector<8x256xbf16>
    %c0_7 = arith.constant 0 : index
    %c0_8 = arith.constant 0 : index
    %17 = vector.load %arg6[%c0_7, %c0_8] : memref<1x256xi32, #tpu.memory_space<vmem>>, vector<1x256xi32>
    %c0_9 = arith.constant 0 : index
    %c0_10 = arith.constant 0 : index
    %18 = vector.load %arg7[%c0_9, %c0_10] : memref<1x256xi32, #tpu.memory_space<vmem>>, vector<1x256xi32>
    %c-2_i32 = arith.constant -2 : i32
    %19 = vector.broadcast %c-2_i32 : i32 to vector<1x256xi32>
    %20 = arith.addi %17, %19 : vector<1x256xi32>
    %c0_i32 = arith.constant 0 : i32
    %21 = vector.broadcast %c0_i32 : i32 to vector<1x256xi32>
    %22 = arith.cmpi sge, %20, %21 : vector<1x256xi32>
    %c-2_i32_11 = arith.constant -2 : i32
    %23 = vector.broadcast %c-2_i32_11 : i32 to vector<1x256xi32>
    %24 = arith.addi %17, %23 : vector<1x256xi32>
    %c8_i32 = arith.constant 8 : i32
    %25 = vector.broadcast %c8_i32 : i32 to vector<1x256xi32>
    %26 = arith.cmpi slt, %24, %25 : vector<1x256xi32>
    %27 = arith.andi %22, %26 : vector<1x256xi1>
    %c-2_i32_12 = arith.constant -2 : i32
    %28 = vector.broadcast %c-2_i32_12 : i32 to vector<1x256xi32>
    %29 = arith.addi %18, %28 : vector<1x256xi32>
    %c0_i32_13 = arith.constant 0 : i32
    %30 = vector.broadcast %c0_i32_13 : i32 to vector<1x256xi32>
    %31 = arith.cmpi sge, %29, %30 : vector<1x256xi32>
    %c-2_i32_14 = arith.constant -2 : i32
    %32 = vector.broadcast %c-2_i32_14 : i32 to vector<1x256xi32>
    %33 = arith.addi %18, %32 : vector<1x256xi32>
    %c16_i32 = arith.constant 16 : i32
    %34 = vector.broadcast %c16_i32 : i32 to vector<1x256xi32>
    %35 = arith.cmpi slt, %33, %34 : vector<1x256xi32>
    %36 = arith.andi %31, %35 : vector<1x256xi1>
    %37 = arith.andi %27, %36 : vector<1x256xi1>
    %cst_15 = arith.constant 1.000000e+00 : f32
    %cst_16 = arith.constant 0.000000e+00 : f32
    %38 = vector.broadcast %cst_15 : f32 to vector<1x256xf32>
    %39 = vector.broadcast %cst_16 : f32 to vector<1x256xf32>
    %40 = arith.select %37, %38, %39 : vector<1x256xi1>, vector<1x256xf32>
    %41 = arith.truncf %40 : vector<1x256xf32> to vector<1x256xbf16>
    %42 = vector.extract_strided_slice %16 {offsets = [0, 222], sizes = [8, 34], strides = [1, 1]} : vector<8x256xbf16> to vector<8x34xbf16>
    %43 = vector.extract_strided_slice %16 {offsets = [0, 0], sizes = [8, 222], strides = [1, 1]} : vector<8x256xbf16> to vector<8x222xbf16>
    %44 = tpu.concatenate %42, %43 in 1 : vector<8x34xbf16>, vector<8x222xbf16> -> vector<8x256xbf16>
    %45 = vector.broadcast %41 : vector<1x256xbf16> to vector<8x256xbf16>
    %46 = arith.mulf %44, %45 : vector<8x256xbf16>
    %c0_17 = arith.constant 0 : index
    %c0_18 = arith.constant 0 : index
    %c0_19 = arith.constant 0 : index
    %47 = vector.load %arg4[%c0_17, %c0_18, %c0_19] : memref<9x8x8xbf16, #tpu.memory_space<vmem>>, vector<1x8x8xbf16>
    %48 = vector.shape_cast %47 : vector<1x8x8xbf16> to vector<8x8xbf16>
    %cst_20 = arith.constant dense<0.000000e+00> : vector<8x256xf32>
    %49 = tpu.matmul %48, %46, %cst_20 {dimension_numbers = #tpu.dot_dimension_numbers<[1], [0], [0], [1], [0, 0, 1, 1], [], []>} : vector<8x8xbf16>, vector<8x256xbf16>, vector<8x256xf32> -> vector<8x256xf32>
    %c0_i32_21 = arith.constant 0 : i32
    %50 = vector.broadcast %c0_i32_21 : i32 to vector<1x256xi32>
    %51 = arith.addi %18, %50 : vector<1x256xi32>
    %c0_i32_22 = arith.constant 0 : i32
    %52 = vector.broadcast %c0_i32_22 : i32 to vector<1x256xi32>
    %53 = arith.cmpi sge, %51, %52 : vector<1x256xi32>
    %c0_i32_23 = arith.constant 0 : i32
    %54 = vector.broadcast %c0_i32_23 : i32 to vector<1x256xi32>
    %55 = arith.addi %18, %54 : vector<1x256xi32>
    %c16_i32_24 = arith.constant 16 : i32
    %56 = vector.broadcast %c16_i32_24 : i32 to vector<1x256xi32>
    %57 = arith.cmpi slt, %55, %56 : vector<1x256xi32>
    %58 = arith.andi %53, %57 : vector<1x256xi1>
    %59 = arith.andi %27, %58 : vector<1x256xi1>
    %cst_25 = arith.constant 1.000000e+00 : f32
    %cst_26 = arith.constant 0.000000e+00 : f32
    %60 = vector.broadcast %cst_25 : f32 to vector<1x256xf32>
    %61 = vector.broadcast %cst_26 : f32 to vector<1x256xf32>
    %62 = arith.select %59, %60, %61 : vector<1x256xi1>, vector<1x256xf32>
    %63 = arith.truncf %62 : vector<1x256xf32> to vector<1x256xbf16>
    %64 = vector.extract_strided_slice %16 {offsets = [0, 224], sizes = [8, 32], strides = [1, 1]} : vector<8x256xbf16> to vector<8x32xbf16>
    %65 = vector.extract_strided_slice %16 {offsets = [0, 0], sizes = [8, 224], strides = [1, 1]} : vector<8x256xbf16> to vector<8x224xbf16>
    %66 = tpu.concatenate %64, %65 in 1 : vector<8x32xbf16>, vector<8x224xbf16> -> vector<8x256xbf16>
    %67 = vector.broadcast %63 : vector<1x256xbf16> to vector<8x256xbf16>
    %68 = arith.mulf %66, %67 : vector<8x256xbf16>
    %c1 = arith.constant 1 : index
    %c0_27 = arith.constant 0 : index
    %c0_28 = arith.constant 0 : index
    %69 = vector.load %arg4[%c1, %c0_27, %c0_28] : memref<9x8x8xbf16, #tpu.memory_space<vmem>>, vector<1x8x8xbf16>
    %70 = vector.shape_cast %69 : vector<1x8x8xbf16> to vector<8x8xbf16>
    %cst_29 = arith.constant dense<0.000000e+00> : vector<8x256xf32>
    %71 = tpu.matmul %70, %68, %cst_29 {dimension_numbers = #tpu.dot_dimension_numbers<[1], [0], [0], [1], [0, 0, 1, 1], [], []>} : vector<8x8xbf16>, vector<8x256xbf16>, vector<8x256xf32> -> vector<8x256xf32>
    %72 = arith.addf %49, %71 : vector<8x256xf32>
    %c2_i32 = arith.constant 2 : i32
    %73 = vector.broadcast %c2_i32 : i32 to vector<1x256xi32>
    %74 = arith.addi %18, %73 : vector<1x256xi32>
    %c0_i32_30 = arith.constant 0 : i32
    %75 = vector.broadcast %c0_i32_30 : i32 to vector<1x256xi32>
    %76 = arith.cmpi sge, %74, %75 : vector<1x256xi32>
    %c2_i32_31 = arith.constant 2 : i32
    %77 = vector.broadcast %c2_i32_31 : i32 to vector<1x256xi32>
    %78 = arith.addi %18, %77 : vector<1x256xi32>
    %c16_i32_32 = arith.constant 16 : i32
    %79 = vector.broadcast %c16_i32_32 : i32 to vector<1x256xi32>
    %80 = arith.cmpi slt, %78, %79 : vector<1x256xi32>
    %81 = arith.andi %76, %80 : vector<1x256xi1>
    %82 = arith.andi %27, %81 : vector<1x256xi1>
    %cst_33 = arith.constant 1.000000e+00 : f32
    %cst_34 = arith.constant 0.000000e+00 : f32
    %83 = vector.broadcast %cst_33 : f32 to vector<1x256xf32>
    %84 = vector.broadcast %cst_34 : f32 to vector<1x256xf32>
    %85 = arith.select %82, %83, %84 : vector<1x256xi1>, vector<1x256xf32>
    %86 = arith.truncf %85 : vector<1x256xf32> to vector<1x256xbf16>
    %87 = vector.extract_strided_slice %16 {offsets = [0, 226], sizes = [8, 30], strides = [1, 1]} : vector<8x256xbf16> to vector<8x30xbf16>
    %88 = vector.extract_strided_slice %16 {offsets = [0, 0], sizes = [8, 226], strides = [1, 1]} : vector<8x256xbf16> to vector<8x226xbf16>
    %89 = tpu.concatenate %87, %88 in 1 : vector<8x30xbf16>, vector<8x226xbf16> -> vector<8x256xbf16>
    %90 = vector.broadcast %86 : vector<1x256xbf16> to vector<8x256xbf16>
    %91 = arith.mulf %89, %90 : vector<8x256xbf16>
    %c2 = arith.constant 2 : index
    %c0_35 = arith.constant 0 : index
    %c0_36 = arith.constant 0 : index
    %92 = vector.load %arg4[%c2, %c0_35, %c0_36] : memref<9x8x8xbf16, #tpu.memory_space<vmem>>, vector<1x8x8xbf16>
    %93 = vector.shape_cast %92 : vector<1x8x8xbf16> to vector<8x8xbf16>
    %cst_37 = arith.constant dense<0.000000e+00> : vector<8x256xf32>
    %94 = tpu.matmul %93, %91, %cst_37 {dimension_numbers = #tpu.dot_dimension_numbers<[1], [0], [0], [1], [0, 0, 1, 1], [], []>} : vector<8x8xbf16>, vector<8x256xbf16>, vector<8x256xf32> -> vector<8x256xf32>
    %95 = arith.addf %72, %94 : vector<8x256xf32>
    %c0_i32_38 = arith.constant 0 : i32
    %96 = vector.broadcast %c0_i32_38 : i32 to vector<1x256xi32>
    %97 = arith.addi %17, %96 : vector<1x256xi32>
    %c0_i32_39 = arith.constant 0 : i32
    %98 = vector.broadcast %c0_i32_39 : i32 to vector<1x256xi32>
    %99 = arith.cmpi sge, %97, %98 : vector<1x256xi32>
    %c0_i32_40 = arith.constant 0 : i32
    %100 = vector.broadcast %c0_i32_40 : i32 to vector<1x256xi32>
    %101 = arith.addi %17, %100 : vector<1x256xi32>
    %c8_i32_41 = arith.constant 8 : i32
    %102 = vector.broadcast %c8_i32_41 : i32 to vector<1x256xi32>
    %103 = arith.cmpi slt, %101, %102 : vector<1x256xi32>
    %104 = arith.andi %99, %103 : vector<1x256xi1>
    %c-2_i32_42 = arith.constant -2 : i32
    %105 = vector.broadcast %c-2_i32_42 : i32 to vector<1x256xi32>
    %106 = arith.addi %18, %105 : vector<1x256xi32>
    %c0_i32_43 = arith.constant 0 : i32
    %107 = vector.broadcast %c0_i32_43 : i32 to vector<1x256xi32>
    %108 = arith.cmpi sge, %106, %107 : vector<1x256xi32>
    %c-2_i32_44 = arith.constant -2 : i32
    %109 = vector.broadcast %c-2_i32_44 : i32 to vector<1x256xi32>
    %110 = arith.addi %18, %109 : vector<1x256xi32>
    %c16_i32_45 = arith.constant 16 : i32
    %111 = vector.broadcast %c16_i32_45 : i32 to vector<1x256xi32>
    %112 = arith.cmpi slt, %110, %111 : vector<1x256xi32>
    %113 = arith.andi %108, %112 : vector<1x256xi1>
    %114 = arith.andi %104, %113 : vector<1x256xi1>
    %cst_46 = arith.constant 1.000000e+00 : f32
    %cst_47 = arith.constant 0.000000e+00 : f32
    %115 = vector.broadcast %cst_46 : f32 to vector<1x256xf32>
    %116 = vector.broadcast %cst_47 : f32 to vector<1x256xf32>
    %117 = arith.select %114, %115, %116 : vector<1x256xi1>, vector<1x256xf32>
    %118 = arith.truncf %117 : vector<1x256xf32> to vector<1x256xbf16>
    %119 = vector.extract_strided_slice %16 {offsets = [0, 254], sizes = [8, 2], strides = [1, 1]} : vector<8x256xbf16> to vector<8x2xbf16>
    %120 = vector.extract_strided_slice %16 {offsets = [0, 0], sizes = [8, 254], strides = [1, 1]} : vector<8x256xbf16> to vector<8x254xbf16>
    %121 = tpu.concatenate %119, %120 in 1 : vector<8x2xbf16>, vector<8x254xbf16> -> vector<8x256xbf16>
    %122 = vector.broadcast %118 : vector<1x256xbf16> to vector<8x256xbf16>
    %123 = arith.mulf %121, %122 : vector<8x256xbf16>
    %c3 = arith.constant 3 : index
    %c0_48 = arith.constant 0 : index
    %c0_49 = arith.constant 0 : index
    %124 = vector.load %arg4[%c3, %c0_48, %c0_49] : memref<9x8x8xbf16, #tpu.memory_space<vmem>>, vector<1x8x8xbf16>
    %125 = vector.shape_cast %124 : vector<1x8x8xbf16> to vector<8x8xbf16>
    %cst_50 = arith.constant dense<0.000000e+00> : vector<8x256xf32>
    %126 = tpu.matmul %125, %123, %cst_50 {dimension_numbers = #tpu.dot_dimension_numbers<[1], [0], [0], [1], [0, 0, 1, 1], [], []>} : vector<8x8xbf16>, vector<8x256xbf16>, vector<8x256xf32> -> vector<8x256xf32>
    %127 = arith.addf %95, %126 : vector<8x256xf32>
    %c0_i32_51 = arith.constant 0 : i32
    %128 = vector.broadcast %c0_i32_51 : i32 to vector<1x256xi32>
    %129 = arith.addi %18, %128 : vector<1x256xi32>
    %c0_i32_52 = arith.constant 0 : i32
    %130 = vector.broadcast %c0_i32_52 : i32 to vector<1x256xi32>
    %131 = arith.cmpi sge, %129, %130 : vector<1x256xi32>
    %c0_i32_53 = arith.constant 0 : i32
    %132 = vector.broadcast %c0_i32_53 : i32 to vector<1x256xi32>
    %133 = arith.addi %18, %132 : vector<1x256xi32>
    %c16_i32_54 = arith.constant 16 : i32
    %134 = vector.broadcast %c16_i32_54 : i32 to vector<1x256xi32>
    %135 = arith.cmpi slt, %133, %134 : vector<1x256xi32>
    %136 = arith.andi %131, %135 : vector<1x256xi1>
    %137 = arith.andi %104, %136 : vector<1x256xi1>
    %cst_55 = arith.constant 1.000000e+00 : f32
    %cst_56 = arith.constant 0.000000e+00 : f32
    %138 = vector.broadcast %cst_55 : f32 to vector<1x256xf32>
    %139 = vector.broadcast %cst_56 : f32 to vector<1x256xf32>
    %140 = arith.select %137, %138, %139 : vector<1x256xi1>, vector<1x256xf32>
    %141 = arith.truncf %140 : vector<1x256xf32> to vector<1x256xbf16>
    %142 = vector.broadcast %141 : vector<1x256xbf16> to vector<8x256xbf16>
    %143 = arith.mulf %16, %142 : vector<8x256xbf16>
    %c4 = arith.constant 4 : index
    %c0_57 = arith.constant 0 : index
    %c0_58 = arith.constant 0 : index
    %144 = vector.load %arg4[%c4, %c0_57, %c0_58] : memref<9x8x8xbf16, #tpu.memory_space<vmem>>, vector<1x8x8xbf16>
    %145 = vector.shape_cast %144 : vector<1x8x8xbf16> to vector<8x8xbf16>
    %cst_59 = arith.constant dense<0.000000e+00> : vector<8x256xf32>
    %146 = tpu.matmul %145, %143, %cst_59 {dimension_numbers = #tpu.dot_dimension_numbers<[1], [0], [0], [1], [0, 0, 1, 1], [], []>} : vector<8x8xbf16>, vector<8x256xbf16>, vector<8x256xf32> -> vector<8x256xf32>
    %147 = arith.addf %127, %146 : vector<8x256xf32>
    %c2_i32_60 = arith.constant 2 : i32
    %148 = vector.broadcast %c2_i32_60 : i32 to vector<1x256xi32>
    %149 = arith.addi %18, %148 : vector<1x256xi32>
    %c0_i32_61 = arith.constant 0 : i32
    %150 = vector.broadcast %c0_i32_61 : i32 to vector<1x256xi32>
    %151 = arith.cmpi sge, %149, %150 : vector<1x256xi32>
    %c2_i32_62 = arith.constant 2 : i32
    %152 = vector.broadcast %c2_i32_62 : i32 to vector<1x256xi32>
    %153 = arith.addi %18, %152 : vector<1x256xi32>
    %c16_i32_63 = arith.constant 16 : i32
    %154 = vector.broadcast %c16_i32_63 : i32 to vector<1x256xi32>
    %155 = arith.cmpi slt, %153, %154 : vector<1x256xi32>
    %156 = arith.andi %151, %155 : vector<1x256xi1>
    %157 = arith.andi %104, %156 : vector<1x256xi1>
    %cst_64 = arith.constant 1.000000e+00 : f32
    %cst_65 = arith.constant 0.000000e+00 : f32
    %158 = vector.broadcast %cst_64 : f32 to vector<1x256xf32>
    %159 = vector.broadcast %cst_65 : f32 to vector<1x256xf32>
    %160 = arith.select %157, %158, %159 : vector<1x256xi1>, vector<1x256xf32>
    %161 = arith.truncf %160 : vector<1x256xf32> to vector<1x256xbf16>
    %162 = vector.extract_strided_slice %16 {offsets = [0, 2], sizes = [8, 254], strides = [1, 1]} : vector<8x256xbf16> to vector<8x254xbf16>
    %163 = vector.extract_strided_slice %16 {offsets = [0, 0], sizes = [8, 2], strides = [1, 1]} : vector<8x256xbf16> to vector<8x2xbf16>
    %164 = tpu.concatenate %162, %163 in 1 : vector<8x254xbf16>, vector<8x2xbf16> -> vector<8x256xbf16>
    %165 = vector.broadcast %161 : vector<1x256xbf16> to vector<8x256xbf16>
    %166 = arith.mulf %164, %165 : vector<8x256xbf16>
    %c5 = arith.constant 5 : index
    %c0_66 = arith.constant 0 : index
    %c0_67 = arith.constant 0 : index
    %167 = vector.load %arg4[%c5, %c0_66, %c0_67] : memref<9x8x8xbf16, #tpu.memory_space<vmem>>, vector<1x8x8xbf16>
    %168 = vector.shape_cast %167 : vector<1x8x8xbf16> to vector<8x8xbf16>
    %cst_68 = arith.constant dense<0.000000e+00> : vector<8x256xf32>
    %169 = tpu.matmul %168, %166, %cst_68 {dimension_numbers = #tpu.dot_dimension_numbers<[1], [0], [0], [1], [0, 0, 1, 1], [], []>} : vector<8x8xbf16>, vector<8x256xbf16>, vector<8x256xf32> -> vector<8x256xf32>
    %170 = arith.addf %147, %169 : vector<8x256xf32>
    %c2_i32_69 = arith.constant 2 : i32
    %171 = vector.broadcast %c2_i32_69 : i32 to vector<1x256xi32>
    %172 = arith.addi %17, %171 : vector<1x256xi32>
    %c0_i32_70 = arith.constant 0 : i32
    %173 = vector.broadcast %c0_i32_70 : i32 to vector<1x256xi32>
    %174 = arith.cmpi sge, %172, %173 : vector<1x256xi32>
    %c2_i32_71 = arith.constant 2 : i32
    %175 = vector.broadcast %c2_i32_71 : i32 to vector<1x256xi32>
    %176 = arith.addi %17, %175 : vector<1x256xi32>
    %c8_i32_72 = arith.constant 8 : i32
    %177 = vector.broadcast %c8_i32_72 : i32 to vector<1x256xi32>
    %178 = arith.cmpi slt, %176, %177 : vector<1x256xi32>
    %179 = arith.andi %174, %178 : vector<1x256xi1>
    %c-2_i32_73 = arith.constant -2 : i32
    %180 = vector.broadcast %c-2_i32_73 : i32 to vector<1x256xi32>
    %181 = arith.addi %18, %180 : vector<1x256xi32>
    %c0_i32_74 = arith.constant 0 : i32
    %182 = vector.broadcast %c0_i32_74 : i32 to vector<1x256xi32>
    %183 = arith.cmpi sge, %181, %182 : vector<1x256xi32>
    %c-2_i32_75 = arith.constant -2 : i32
    %184 = vector.broadcast %c-2_i32_75 : i32 to vector<1x256xi32>
    %185 = arith.addi %18, %184 : vector<1x256xi32>
    %c16_i32_76 = arith.constant 16 : i32
    %186 = vector.broadcast %c16_i32_76 : i32 to vector<1x256xi32>
    %187 = arith.cmpi slt, %185, %186 : vector<1x256xi32>
    %188 = arith.andi %183, %187 : vector<1x256xi1>
    %189 = arith.andi %179, %188 : vector<1x256xi1>
    %cst_77 = arith.constant 1.000000e+00 : f32
    %cst_78 = arith.constant 0.000000e+00 : f32
    %190 = vector.broadcast %cst_77 : f32 to vector<1x256xf32>
    %191 = vector.broadcast %cst_78 : f32 to vector<1x256xf32>
    %192 = arith.select %189, %190, %191 : vector<1x256xi1>, vector<1x256xf32>
    %193 = arith.truncf %192 : vector<1x256xf32> to vector<1x256xbf16>
    %194 = vector.extract_strided_slice %16 {offsets = [0, 30], sizes = [8, 226], strides = [1, 1]} : vector<8x256xbf16> to vector<8x226xbf16>
    %195 = vector.extract_strided_slice %16 {offsets = [0, 0], sizes = [8, 30], strides = [1, 1]} : vector<8x256xbf16> to vector<8x30xbf16>
    %196 = tpu.concatenate %194, %195 in 1 : vector<8x226xbf16>, vector<8x30xbf16> -> vector<8x256xbf16>
    %197 = vector.broadcast %193 : vector<1x256xbf16> to vector<8x256xbf16>
    %198 = arith.mulf %196, %197 : vector<8x256xbf16>
    %c6 = arith.constant 6 : index
    %c0_79 = arith.constant 0 : index
    %c0_80 = arith.constant 0 : index
    %199 = vector.load %arg4[%c6, %c0_79, %c0_80] : memref<9x8x8xbf16, #tpu.memory_space<vmem>>, vector<1x8x8xbf16>
    %200 = vector.shape_cast %199 : vector<1x8x8xbf16> to vector<8x8xbf16>
    %cst_81 = arith.constant dense<0.000000e+00> : vector<8x256xf32>
    %201 = tpu.matmul %200, %198, %cst_81 {dimension_numbers = #tpu.dot_dimension_numbers<[1], [0], [0], [1], [0, 0, 1, 1], [], []>} : vector<8x8xbf16>, vector<8x256xbf16>, vector<8x256xf32> -> vector<8x256xf32>
    %202 = arith.addf %170, %201 : vector<8x256xf32>
    %c0_i32_82 = arith.constant 0 : i32
    %203 = vector.broadcast %c0_i32_82 : i32 to vector<1x256xi32>
    %204 = arith.addi %18, %203 : vector<1x256xi32>
    %c0_i32_83 = arith.constant 0 : i32
    %205 = vector.broadcast %c0_i32_83 : i32 to vector<1x256xi32>
    %206 = arith.cmpi sge, %204, %205 : vector<1x256xi32>
    %c0_i32_84 = arith.constant 0 : i32
    %207 = vector.broadcast %c0_i32_84 : i32 to vector<1x256xi32>
    %208 = arith.addi %18, %207 : vector<1x256xi32>
    %c16_i32_85 = arith.constant 16 : i32
    %209 = vector.broadcast %c16_i32_85 : i32 to vector<1x256xi32>
    %210 = arith.cmpi slt, %208, %209 : vector<1x256xi32>
    %211 = arith.andi %206, %210 : vector<1x256xi1>
    %212 = arith.andi %179, %211 : vector<1x256xi1>
    %cst_86 = arith.constant 1.000000e+00 : f32
    %cst_87 = arith.constant 0.000000e+00 : f32
    %213 = vector.broadcast %cst_86 : f32 to vector<1x256xf32>
    %214 = vector.broadcast %cst_87 : f32 to vector<1x256xf32>
    %215 = arith.select %212, %213, %214 : vector<1x256xi1>, vector<1x256xf32>
    %216 = arith.truncf %215 : vector<1x256xf32> to vector<1x256xbf16>
    %217 = vector.extract_strided_slice %16 {offsets = [0, 32], sizes = [8, 224], strides = [1, 1]} : vector<8x256xbf16> to vector<8x224xbf16>
    %218 = vector.extract_strided_slice %16 {offsets = [0, 0], sizes = [8, 32], strides = [1, 1]} : vector<8x256xbf16> to vector<8x32xbf16>
    %219 = tpu.concatenate %217, %218 in 1 : vector<8x224xbf16>, vector<8x32xbf16> -> vector<8x256xbf16>
    %220 = vector.broadcast %216 : vector<1x256xbf16> to vector<8x256xbf16>
    %221 = arith.mulf %219, %220 : vector<8x256xbf16>
    %c7 = arith.constant 7 : index
    %c0_88 = arith.constant 0 : index
    %c0_89 = arith.constant 0 : index
    %222 = vector.load %arg4[%c7, %c0_88, %c0_89] : memref<9x8x8xbf16, #tpu.memory_space<vmem>>, vector<1x8x8xbf16>
    %223 = vector.shape_cast %222 : vector<1x8x8xbf16> to vector<8x8xbf16>
    %cst_90 = arith.constant dense<0.000000e+00> : vector<8x256xf32>
    %224 = tpu.matmul %223, %221, %cst_90 {dimension_numbers = #tpu.dot_dimension_numbers<[1], [0], [0], [1], [0, 0, 1, 1], [], []>} : vector<8x8xbf16>, vector<8x256xbf16>, vector<8x256xf32> -> vector<8x256xf32>
    %225 = arith.addf %202, %224 : vector<8x256xf32>
    %c2_i32_91 = arith.constant 2 : i32
    %226 = vector.broadcast %c2_i32_91 : i32 to vector<1x256xi32>
    %227 = arith.addi %18, %226 : vector<1x256xi32>
    %c0_i32_92 = arith.constant 0 : i32
    %228 = vector.broadcast %c0_i32_92 : i32 to vector<1x256xi32>
    %229 = arith.cmpi sge, %227, %228 : vector<1x256xi32>
    %c2_i32_93 = arith.constant 2 : i32
    %230 = vector.broadcast %c2_i32_93 : i32 to vector<1x256xi32>
    %231 = arith.addi %18, %230 : vector<1x256xi32>
    %c16_i32_94 = arith.constant 16 : i32
    %232 = vector.broadcast %c16_i32_94 : i32 to vector<1x256xi32>
    %233 = arith.cmpi slt, %231, %232 : vector<1x256xi32>
    %234 = arith.andi %229, %233 : vector<1x256xi1>
    %235 = arith.andi %179, %234 : vector<1x256xi1>
    %cst_95 = arith.constant 1.000000e+00 : f32
    %cst_96 = arith.constant 0.000000e+00 : f32
    %236 = vector.broadcast %cst_95 : f32 to vector<1x256xf32>
    %237 = vector.broadcast %cst_96 : f32 to vector<1x256xf32>
    %238 = arith.select %235, %236, %237 : vector<1x256xi1>, vector<1x256xf32>
    %239 = arith.truncf %238 : vector<1x256xf32> to vector<1x256xbf16>
    %240 = vector.extract_strided_slice %16 {offsets = [0, 34], sizes = [8, 222], strides = [1, 1]} : vector<8x256xbf16> to vector<8x222xbf16>
    %241 = vector.extract_strided_slice %16 {offsets = [0, 0], sizes = [8, 34], strides = [1, 1]} : vector<8x256xbf16> to vector<8x34xbf16>
    %242 = tpu.concatenate %240, %241 in 1 : vector<8x222xbf16>, vector<8x34xbf16> -> vector<8x256xbf16>
    %243 = vector.broadcast %239 : vector<1x256xbf16> to vector<8x256xbf16>
    %244 = arith.mulf %242, %243 : vector<8x256xbf16>
    %c8 = arith.constant 8 : index
    %c0_97 = arith.constant 0 : index
    %c0_98 = arith.constant 0 : index
    %245 = vector.load %arg4[%c8, %c0_97, %c0_98] : memref<9x8x8xbf16, #tpu.memory_space<vmem>>, vector<1x8x8xbf16>
    %246 = vector.shape_cast %245 : vector<1x8x8xbf16> to vector<8x8xbf16>
    %cst_99 = arith.constant dense<0.000000e+00> : vector<8x256xf32>
    %247 = tpu.matmul %246, %244, %cst_99 {dimension_numbers = #tpu.dot_dimension_numbers<[1], [0], [0], [1], [0, 0, 1, 1], [], []>} : vector<8x8xbf16>, vector<8x256xbf16>, vector<8x256xf32> -> vector<8x256xf32>
    %248 = arith.addf %225, %247 : vector<8x256xf32>
    %c0_100 = arith.constant 0 : index
    %c0_101 = arith.constant 0 : index
    %249 = vector.load %arg5[%c0_100, %c0_101] : memref<8x1xf32, #tpu.memory_space<vmem>>, vector<8x1xf32>
    %250 = vector.broadcast %249 : vector<8x1xf32> to vector<8x256xf32>
    %251 = arith.addf %248, %250 : vector<8x256xf32>
    %252 = arith.truncf %251 : vector<8x256xf32> to vector<8x256xbf16>
    %c0_102 = arith.constant 0 : index
    %c0_103 = arith.constant 0 : index
    %253 = vector.load %arg8[%c0_102, %c0_103] : memref<8x256xbf16, #tpu.memory_space<vmem>>, vector<8x256xbf16>
    tpu.vector_store %arg8[%c0_102, %c0_103], %252 {strides = array<i32>} : memref<8x256xbf16, #tpu.memory_space<vmem>>, vector<8x256xbf16>,
    %cst_104 = arith.constant dense<0.000000e+00> : vector<8xf32>
    %254 = vector.multi_reduction <add>, %251, %cst_104 [1] : vector<8x256xf32> to vector<8xf32>
    %255 = vector.shape_cast %254 : vector<8xf32> to vector<8x1xf32>
    %256 = arith.mulf %251, %251 : vector<8x256xf32>
    %cst_105 = arith.constant dense<0.000000e+00> : vector<8xf32>
    %257 = vector.multi_reduction <add>, %256, %cst_105 [1] : vector<8x256xf32> to vector<8xf32>
    %258 = vector.shape_cast %257 : vector<8xf32> to vector<8x1xf32>
    %259 = tpu.concatenate %255, %258 in 1 : vector<8x1xf32>, vector<8x1xf32> -> vector<8x2xf32>
    %260 = vector.shape_cast %259 : vector<8x2xf32> to vector<1x8x2xf32>
    %c0_106 = arith.constant 0 : index
    %c0_107 = arith.constant 0 : index
    %c0_108 = arith.constant 0 : index
    %261 = vector.load %arg9[%c0_106, %c0_107, %c0_108] : memref<1x8x2xf32, #tpu.memory_space<vmem>>, vector<1x8x2xf32>
    tpu.vector_store %arg9[%c0_106, %c0_107, %c0_108], %260 {strides = array<i32>} : memref<1x8x2xf32, #tpu.memory_space<vmem>>, vector<1x8x2xf32>,
    return
  }
  func.func @transform_0(%arg0: i32) -> (i32, i32) {
    %c0_i32 = arith.constant 0 : i32
    %c0_i32_0 = arith.constant 0 : i32
    return %c0_i32, %arg0 : i32, i32
  }
  func.func @transform_1(%arg0: i32) -> (i32, i32) {
    %c0_i32 = arith.constant 0 : i32
    %c0_i32_0 = arith.constant 0 : i32
    %c0_i32_1 = arith.constant 0 : i32
    return %c0_i32, %c0_i32_0 : i32, i32
  }
  func.func @transform_2(%arg0: i32) -> (i32, i32) {
    %c0_i32 = arith.constant 0 : i32
    %c0_i32_0 = arith.constant 0 : i32
    %c0_i32_1 = arith.constant 0 : i32
    return %c0_i32, %c0_i32_0 : i32, i32
  }
  func.func @transform_3(%arg0: i32) -> (i32, i32, i32) {
    %c0_i32 = arith.constant 0 : i32
    %c0_i32_0 = arith.constant 0 : i32
    %c0_i32_1 = arith.constant 0 : i32
    %c0_i32_2 = arith.constant 0 : i32
    return %c0_i32, %c0_i32_0, %c0_i32_1 : i32, i32, i32
  }
  func.func @transform_4(%arg0: i32) -> (i32, i32) {
    %c0_i32 = arith.constant 0 : i32
    %c0_i32_0 = arith.constant 0 : i32
    %c0_i32_1 = arith.constant 0 : i32
    return %c0_i32, %c0_i32_0 : i32, i32
  }
  func.func @transform_5(%arg0: i32) -> (i32, i32) {
    %c0_i32 = arith.constant 0 : i32
    %c0_i32_0 = arith.constant 0 : i32
    return %c0_i32, %arg0 : i32, i32
  }
  func.func @transform_6(%arg0: i32) -> (i32, i32) {
    %c0_i32 = arith.constant 0 : i32
    %c0_i32_0 = arith.constant 0 : i32
    return %c0_i32, %arg0 : i32, i32
  }
  func.func @transform_7(%arg0: i32) -> (i32, i32) {
    %c0_i32 = arith.constant 0 : i32
    %c0_i32_0 = arith.constant 0 : i32
    return %c0_i32, %arg0 : i32, i32
  }
  func.func @transform_8(%arg0: i32) -> (i32, i32, i32) {
    %c0_i32 = arith.constant 0 : i32
    %c0_i32_0 = arith.constant 0 : i32
    %c0_i32_1 = arith.constant 0 : i32
    return %arg0, %c0_i32, %c0_i32_0 : i32, i32, i32
  }
}

</mosaic_0001>

<bundles_post_ra>
// kernel: tile.13
= control target key start
LH: loop header
LB: loop body
LE: loop exit
PB: predicated region body
PF: predicated region fallthrough
CT: control target
= control target key end

     0   :  { %s22_s0 = inlined_call_operand.vmem [shape: s32[128], index: 0, kind: input, shape index: {}]   ;;  %s23_s1 = inlined_call_operand.vmem [shape: s32[2,128], index: 1, kind: output, shape index: {}]  }
   0x1   :  { %v4_v0 = vld [vmem:[%s22_s0] ss:$0 sm:$0xff] }
   0x2   :  { %5 = vst [vmem:[%s23_s1] sm:$0x3] %v4_v0 }

// kernel: down_transition_forward.7
= control target key start
LH: loop header
LB: loop body
LE: loop exit
PB: predicated region body
PF: predicated region fallthrough
CT: control target
= control target key end

     0   :  { %s442_s15 = smov 0   ;;  %s444_s16 = smov 0   ;;  %s484_s0 = inlined_call_operand.vmem [shape: bf16[8,256], index: 0, kind: input, shape index: {}]   ;;  %s485_s1 = inlined_call_operand.vmem [shape: bf16[8,256], index: 1, kind: input, shape index: {}]   ;;  %s486_s2 = inlined_call_operand.vmem [shape: f32[8,1], index: 2, kind: input, shape index: {}]   ;;  %s487_s3 = inlined_call_operand.vmem [shape: f32[8,1], index: 3, kind: input, shape index: {}]   ;;  %s488_s4 = inlined_call_operand.vmem [shape: f32[2,8,128], index: 4, kind: output, shape index: {}]  }
   0x1   :  { %s446_s17 = smov 0  }
   0x2 LB: > { %s26_s18 = sadd.s32 1, %s410_s16  ;;  %p357_p0 = scmp.ge.s32.totalorder %s414_s17, 1  ;;  %s414_s17 = sphi %s446_s17, %s14_s17   ;;  %s410_s16 = sphi %s444_s16, %s490_s16   ;;  %s406_s15 = sphi %s442_s15, %s489_s15  }
   0x3   : > { %p28_p1 = scmp.ge.s32.totalorder %s26_s18, 2  ;;  %p192_p2 = scmp.lt.s32.totalorder %s414_s17, 3 }
   0x5   : > { %s492_s18 = smov (%p28_p1, %s26_s18), 0  ;;  %p193_p3 = pnand %p357_p0, %p192_p2 }
   0x6   : > { %v248_v0 = vld [vmem:[%s486_s2] sm:$0xff] (!%p193_p3)  ;;  %v416_v1 = vmov (!%p193_p3), 0   ;;  %p226_p4 = scmp.lt.s32.totalorder (!%p193_p3), %s406_s15, 1 }
   0x7   : > { %196 = sbr.rel (%p193_p3) target bundleno = 163 (0xa3), region = 36  ;;  %389 = vset.pattern.permute.xlu0 (!%p193_p3), %v416_v1  ;;  %v255_v2 = vld [vmem:[%s487_s3] sm:$0xff] (!%p193_p3) }
   0x8   : > { %251 = vperm.xlu0 (!%p193_p3), %389, %v248_v0  }
   0xc   : > { %258 = vperm.xlu0 (!%p193_p3), %389, %v255_v2  }
   0xe   : > { %s494_s15 = smov (!%p226_p4, %s406_s15), 1 }
   0xf   : > { %s358_s23 = sshll.u32 %s494_s15, 2  ;;  %s360_s30 = sshll.u32 %s494_s15, 3 }
  0x10   : > { %s235_s26 = scalar_lea.vmem %s485_s1, %s358_s23  ;;  %s229_s29 = scalar_lea.vmem %s484_s0, %s358_s23 }
  0x11   : > { %v246_v3 = vld [vmem:[%s235_s26] sm:$0xf]  ;;  %s243_s7 = scalar_lea.vmem %s488_s4, %s360_s30 }
  0x12   : > { %v247_v4 = vunpack.c.l.bf16 %v246_v3  ;;  %v244_v6 = vld [vmem:[%s229_s29] sm:$0xf] }
  0x13   : > { %v245_v8 = vunpack.c.l.bf16 %v244_v6 }
  0x87   : > { %v252_v5 = vpop.permute.xlu0 %251 }
  0x88   : > { %v254_v7 = vmul.f32 %v252_v5, %v247_v4 }
  0x8b   : > { %v259_v9 = vpop.permute.xlu0 %258 }
  0x8c   : > { %v261_v10 = vadd.f32 %v259_v9, %v254_v7 }
  0x8e   : > { %v262_v11 = vadd.f32 %v261_v10, %v245_v8 }
  0x90   : > { %v264_v12 = vmin.f32 %v262_v11, 0.0  ;;  %vm263_vm0 = vcmp.gt.f32.partialorder %v262_v11, 0.0 }
  0x92   : > { %v265_v13 = vmul.f32 1.442695, %v264_v12 }
  0x94   : > { %390 = vpow2.f32 %v265_v13 }
  0x9e   : > { %v391_v14 = vpop.eup %390 }
  0x9f   : > { %v361_v15 = vadd.f32 -1.0, %v391_v14 }
  0xa1   : > { %v268_v16 = vsel %vm263_vm0, %v262_v11, %v361_v15 }
  0xa2   : > { %269 = vst [vmem:[%s243_s7] sm:$0xff] %v268_v16 }
  0xa3 PF: > { %s14_s17 = sadd.s32 1, %s414_s17   ;;  %s489_s15 = smov %s410_s16 }
  0xa4   : > { %p11_p5 = scmp.ge.s32.totalorder %s14_s17, 4   ;;  %s490_s16 = smov %s492_s18 }
  0xa6   :  { %13 = sbr.rel (!%p11_p5) target bundleno = 2 (0x2), region = 69 }

// kernel: down_transition_forward.4
= control target key start
LH: loop header
LB: loop body
LE: loop exit
PB: predicated region body
PF: predicated region fallthrough
CT: control target
= control target key end

     0   :  { %v155_v1 = vmov 0   ;;  %vm58_vm0 = vcmask 1041408   ;;  %vm54_vm1 = vcmask 293888   ;;  %vm123_vm2 = vcmask 7168   ;;  %s208_s0 = inlined_call_operand.vmem [shape: bf16[36,256], index: 0, kind: input, shape index: {}]   ;;  %s209_s2 = inlined_call_operand.vmem [shape: f32[8,1], index: 2, kind: input, shape index: {}]   ;;  %s210_s1 = inlined_call_operand.vmem [shape: bf16[8,36], index: 1, kind: input, shape index: {}]   ;;  %s211_s3 = inlined_call_operand.vmem [shape: bf16[8,256], index: 3, kind: output, shape index: {0}]   ;;  %s212_s4 = inlined_call_operand.vmem [shape: f32[1,8,2], index: 4, kind: output, shape index: {1}]  }
   0x1   :  { %v147_v0 = vld [vmem:[%s208_s0 + $0x4] ss:$8 sps:$4 sm:$0xff]   ;;  %97 = vmatprep.mubr.bf16.mxu0 %v155_v1  ;;  %146 = vset.pattern.permute.xlu0 %v155_v1  ;;  %v149_v2 = vld [vmem:[%s208_s0] ss:$8 sps:$4 sm:$0xff]   ;;  %v150_v3 = vld [vmem:[%s208_s0 + $0x14] ss:$8 sps:$4 sm:$0xff]  }
   0x2   :  { %65 = vmatprep.subr.bf16.mxu0 %v147_v0  ;;  %v22_v4 = vld [vmem:[%s208_s0 + $0x20] sm:$0x33]  ;;  %v152_v5 = vld [vmem:[%s208_s0 + $0x10] ss:$8 sps:$4 sm:$0xff]   ;;  %vm125_vm3 = vcmask 15360  }
   0x3   :  { %66 = vmatpush1.bf16.msra.mxu0 %v149_v2  ;;  %v23_v6 = vld [vmem:[%s209_s2] sm:$0xff]  ;;  %v140_v7 = vcombine.high %v22_v4, %v22_v4  ;;  %v139_v8 = vcombine.low %v22_v4, %v22_v4 }
   0x4   :  { %67 = vmatprep.subr.bf16.mxu0 %v150_v3  ;;  %26 = vperm.xlu0 %146, %v23_v6   ;;  %v17_v10 = vld [vmem:[%s210_s1] sm:$0xf] }
   0x5   :  { %v60_v9 = vsel %vm58_vm0, %v139_v8, 0 }
   0x7   :  { %68 = vmatpush1.bf16.msra.mxu0 %v152_v5 }
   0x8   :  { %141 = vmatprep.subr.msk.bf16.mxu0 %vm58_vm0, %v140_v7 }
   0xb   :  { %70 = vmatpush1.bf16.msra.mxu0 %v60_v9 }
   0xe   :  { %142 = vmatmul.mubr.msk.bf16.vlgmr.msra.gmra.mrb[0].mxu0 %vm54_vm1, %v17_v10 }
  0x83   :  { %v27_v11 = vpop.permute.xlu0 %26 }
  0xe1   :  { %v99_v12 = vpop.f32.mrb[0].mxu0 }
  0xe2   :  { %v100_v13 = vadd.f32 %v99_v12, %v27_v11  ;;  %v101_v14 = vpop.f32.mrb[1].mxu0 }
  0xe3   :  { %v102_v15 = vadd.f32 %v101_v14, %v27_v11  ;;  %v103_v16 = vpop.f32.mrb[2].mxu0 }
  0xe4   :  { %v104_v17 = vpop.f32.mrb[3].mxu0  ;;  %v118_v18 = vmul.f32 %v100_v13, %v100_v13 }
  0xe5   :  { %v144_v19 = vpack.c.bf16 %v102_v15, %v100_v13  ;;  %v115_v20 = vadd.f32 %v102_v15, %v100_v13  ;;  %v119_v21 = vmul.f32 %v102_v15, %v102_v15 }
  0xe7   :  { %114 = vst [vmem:[%s211_s3] sm:$0xff] %v144_v19  ;;  %116 = vadd.xlane.f32.xlu0 %v115_v20  ;;  %v120_v22 = vadd.f32 %v119_v21, %v118_v18 }
  0xe9   :  { %121 = vadd.xlane.f32.xlu1 %v120_v22 }
 0x174   :  { %v117_v23 = vpop.xlane.xlu0 %116 }
 0x176   :  { %v122_v24 = vpop.xlane.xlu1 %121 }
 0x177   :  { %v124_v25 = vsel %vm123_vm2, %v117_v23, %v122_v24 }
 0x178   :  { %126 = vst.msk [vmem:[%s212_s4] sm:$0xff] %vm125_vm3, %v124_v25 }

// kernel: down_transition_forward.5
= control target key start
LH: loop header
LB: loop body
LE: loop exit
PB: predicated region body
PF: predicated region fallthrough
CT: control target
= control target key end

     0   :  { %v1027_v0 = vmov 0   ;;  %s1031_s11 = smov 2   ;;  %s1032_s12 = smov 126   ;;  %v75_v29 = vlaneseq  ;;  %v1036_v37 = vmov 0.0   ;;  %s1329_s1 = inlined_call_operand.vmem [shape: f32[8,1], index: 1, kind: input, shape index: {}]   ;;  %s1330_s2 = inlined_call_operand.vmem [shape: f32[8,1], index: 2, kind: input, shape index: {}]   ;;  %s1331_s0 = inlined_call_operand.vmem [shape: bf16[8,256], index: 0, kind: input, shape index: {}]   ;;  %s1332_s4 = inlined_call_operand.vmem [shape: f32[8,1], index: 4, kind: input, shape index: {}]   ;;  %s1333_s5 = inlined_call_operand.vmem [shape: s32[1,256], index: 5, kind: input, shape index: {}]   ;;  %s1334_s6 = inlined_call_operand.vmem [shape: s32[1,256], index: 6, kind: input, shape index: {}]   ;;  %s1335_s3 = inlined_call_operand.vmem [shape: bf16[9,8,8], index: 3, kind: input, shape index: {}]   ;;  %s1336_s7 = inlined_call_operand.vmem [shape: bf16[8,256], index: 7, kind: output, shape index: {0}]   ;;  %s1337_s8 = inlined_call_operand.vmem [shape: f32[1,8,2], index: 8, kind: output, shape index: {1}]  }
   0x1   :  { %1022 = vset.pattern.permute.xlu0 %v1027_v0  ;;  %v32_v1 = vld [vmem:[%s1329_s1] sm:$0xff]  ;;  %209 = vmatprep.mubr.bf16.mxu0 %v1027_v0  ;;  %s1029_s1 = smov 32   ;;  %s1033_s13 = smov 98   ;;  %v989_v39 = vld [vmem:[%s1335_s3 + $0x8] sm:$0xf] }
   0x2   :  { %35 = vperm.xlu0 %1022, %v32_v1   ;;  %259 = vmatprep.mubr.bf16.mxu1 %v1027_v0  ;;  %v40_v2 = vld [vmem:[%s1330_s2] sm:$0xff]  ;;  %s1030_s2 = smov 30   ;;  %s1034_s14 = smov 96   ;;  %v76_v35 = vshrl.u32 %v75_v29, 7 }
   0x3   :  { %v29_v3 = vld [vmem:[%s1331_s0] sm:$0xff]  ;;  %s1028_s0 = smov 34   ;;  %s1035_s15 = smov 94  }
   0x4   :  { %v30_v4 = vunpack.c.l.bf16 %v29_v3  ;;  %v31_v5 = vunpack.c.h.bf16 %v29_v3  ;;  %v946_v24 = vld [vmem:[%s1332_s4] sm:$0xff]  ;;  %v1151_v36 = vsub.s32 0, %v76_v35  ;;  %v1158_v40 = vsub.s32 1, %v76_v35 }
   0x5   :  { %v62_v25 = vld [vmem:[%s1333_s5] sm:$0x3] }
   0x6   :  { %43 = vperm.xlu0 %1022, %v40_v2   ;;  %v63_v26 = vld [vmem:[%s1334_s6] sm:$0x3]  ;;  %v64_v27 = vadd.s32 4294967294, %v62_v25  ;;  %vm369_vm4 = vcmp.ge.s32.totalorder %v62_v25, 0  ;;  %vm370_vm5 = vcmp.lt.s32.totalorder %v62_v25, 8  ;;  %v651_v48 = vadd.s32 2, %v62_v25 }
   0x7   :  { %v68_v28 = vadd.s32 4294967294, %v63_v26  ;;  %vm118_vm2 = vcmp.ge.s32.totalorder %v63_v26, 0  ;;  %vm119_vm3 = vcmp.lt.s32.totalorder %v63_v26, 16  ;;  %v268_v31 = vadd.s32 2, %v63_v26  ;;  %vm1127_vm11 = vmand %vm369_vm4, %vm370_vm5 }
   0x8   :  { %vm65_vm6 = vcmp.ge.s32.totalorder %v64_v27, 0  ;;  %vm66_vm7 = vcmp.lt.s32.totalorder %v64_v27, 8  ;;  %vm1123_vm8 = vmand %vm118_vm2, %vm119_vm3 }
   0x9   :  { %vm69_vm9 = vcmp.ge.s32.totalorder %v68_v28, 0  ;;  %vm70_vm10 = vcmp.lt.s32.totalorder %v68_v28, 16  ;;  %vm1131_vm12 = vmand %vm65_vm6, %vm66_vm7  ;;  %vm652_vm6 = vcmp.ge.s32.totalorder %v651_v48, 0  ;;  %vm653_vm7 = vcmp.lt.s32.totalorder %v651_v48, 8 }
   0xa   :  { %vm1135_vm13 = vmand %vm69_vm9, %vm70_vm10 }
   0xb   :  { %vm469_vm14 = vmand %vm1127_vm11, %vm1123_vm8 }
   0xc   :  { %vm121_vm15 = vmand %vm1131_vm12, %vm1123_vm8  ;;  %v470_v42 = vsel %vm469_vm14, 1.0, %v1036_v37  ;;  %vm170_vm14 = vcmask 1043456  }
   0xd   :  { %vm72_vm2 = vmand %vm1131_vm12, %vm1135_vm13  ;;  %v122_v38 = vsel %vm121_vm15, 1.0, %v1036_v37  ;;  %v475_v46 = vrot.slane %v470_v42, %v1151_v36  ;;  %v479_v50 = vrot.slane %v470_v42, %v1158_v40  ;;  %vm93_vm15 = vcmask 277504  }
   0xe   :  { %v73_v41 = vsel %vm72_vm2, 1.0, %v1036_v37  ;;  %v131_v43 = vrot.slane %v122_v38, %v1158_v40  ;;  %v127_v44 = vrot.slane %v122_v38, %v1151_v36  ;;  %vm372_vm5 = vmand %vm1127_vm11, %vm1135_vm13  ;;  %vm391_vm2 = vcmask 15360  }
   0xf   :  { %v82_v45 = vrot.slane %v73_v41, %v1158_v40  ;;  %v78_v47 = vrot.slane %v73_v41, %v1151_v36  ;;  %v482_v54 = vpack.c.bf16 %v475_v46, %v475_v46  ;;  %v1179_v58 = vpack.c.bf16 %v479_v50, %v479_v50  ;;  %vm1186_vm10 = vmand %vm652_vm6, %vm653_vm7  ;;  %v984_v46 = vld [vmem:[%s1335_s3 + $0x4] sm:$0xf] }
  0x10   :  { %v135_v51 = vpack.c.bf16 %v131_v43, %v131_v43  ;;  %v134_v52 = vpack.c.bf16 %v127_v44, %v127_v44  ;;  %v373_v61 = vsel %vm372_vm5, 1.0, %v1036_v37  ;;  %vm771_vm5 = vcmask 785408  }
  0x11   :  { %v86_v53 = vpack.c.bf16 %v82_v45, %v82_v45  ;;  %v85_v56 = vpack.c.bf16 %v78_v47, %v78_v47  ;;  %v485_v62 = vpack.i.b16 %v482_v54, %v482_v54  ;;  %vm868_vm6 = vcmask 769024  }
  0x12   :  { %v156_v59 = vpack.i.b16 %v135_v51, %v135_v51  ;;  %v149_v60 = vpack.i.b16 %v134_v52, %v134_v52  ;;  %vm971_vm7 = vcmask 7168  }
  0x13   :  { %v109_v3 = vpack.i.b16 %v86_v53, %v86_v53 }
  0x81   :  { %v36_v6 = vpop.permute.xlu0 %35 }
  0x82   :  { %v38_v7 = vmul.f32 %v36_v6, %v30_v4  ;;  %v39_v8 = vmul.f32 %v36_v6, %v31_v5  ;;  %v102_v5 = vpack.i.b16 %v85_v56, %v85_v56 }
  0x85   :  { %v44_v9 = vpop.permute.xlu0 %43 }
  0x86   :  { %v46_v10 = vadd.f32 %v44_v9, %v38_v7  ;;  %v47_v11 = vadd.f32 %v44_v9, %v39_v8  ;;  %v492_v8 = vpack.i.b16 %v1179_v58, %v1179_v58  ;;  %v161_v9 = vrot.slane %v156_v59, %v1151_v36 }
  0x88   :  { %v50_v12 = vmin.f32 %v46_v10, 0.0  ;;  %v51_v13 = vmin.f32 %v47_v11, 0.0  ;;  %vm49_vm0 = vcmp.gt.f32.partialorder %v47_v11, 0.0  ;;  %vm48_vm1 = vcmp.gt.f32.partialorder %v46_v10, 0.0 }
  0x89   :  { %v497_v53 = vrot.slane %v492_v8, %v1151_v36 }
  0x8a   :  { %v52_v14 = vmul.f32 1.442695, %v50_v12  ;;  %v54_v15 = vmul.f32 1.442695, %v51_v13  ;;  %v382_v12 = vrot.slane %v373_v61, %v1158_v40 }
  0x8c   :  { %1023 = vpow2.f32 %v52_v14 }
  0x8d   :  { %1025 = vpow2.f32 %v54_v15  ;;  %v1204_v15 = vrot.slane %v485_v62, %v1151_v36  ;;  %v117_v62 = vld [vmem:[%s1335_s3] sm:$0xf] }
  0x96   :  { %v1024_v16 = vpop.eup %1023 }
  0x97   :  { %v1026_v17 = vpop.eup %1025  ;;  %v982_v18 = vadd.f32 -1.0, %v1024_v16 }
  0x98   :  { %v983_v19 = vadd.f32 -1.0, %v1026_v17 }
  0x99   :  { %v58_v22 = vsel %vm48_vm1, %v46_v10, %v982_v18  ;;  %vm270_vm1 = vcmp.lt.s32.totalorder %v268_v31, 16  ;;  %v154_v10 = vrot.slane %v149_v60, %v1151_v36  ;;  %v114_v18 = vrot.slane %v109_v3, %v1151_v36 }
  0x9a   :  { %v59_v20 = vsel %vm49_vm0, %v47_v11, %v983_v19  ;;  %v1098_v23 = vpack.c.bf16 %v58_v22, %v58_v22  ;;  %vm269_vm0 = vcmp.ge.s32.totalorder %v268_v31, 0  ;;  %v378_v11 = vrot.slane %v373_v61, %v1151_v36 }
  0x9b   :  { %v1094_v21 = vpack.c.bf16 %v59_v20, %v59_v20  ;;  %vm1154_vm3 = vmand %vm269_vm0, %vm270_vm1  ;;  %v107_v20 = vrot.slane %v102_v5, %v1151_v36  ;;  %v386_v31 = vpack.c.bf16 %v382_v12, %v382_v12  ;;  %vm166_vm0 = vcmask 64512  }
  0x9c   :  { %vm272_vm4 = vmand %vm1131_vm12, %vm1154_vm3  ;;  %vm140_vm12 = vcmask 261120   ;;  %v385_v29 = vpack.c.bf16 %v378_v11, %v378_v11  ;;  %vm291_vm1 = vcmask 244736   ;;  %v498_v56 = vmul.bf16 %v1204_v15, %v1098_v23 }
  0x9d   :  { %88 = vrot.lane.b32.xlu0 %v1094_v21, %s1028_s0  ;;  %136 = vrot.lane.b32.xlu1 %v1094_v21, %s1029_s1  ;;  %v273_v49 = vsel %vm272_vm4, 1.0, %v1036_v37  ;;  %vm554_vm9 = vmand %vm1127_vm11, %vm1154_vm3  ;;  %v407_v52 = vpack.i.b16 %v386_v31, %v386_v31  ;;  %vm674_vm4 = vcmask 801792  }
  0x9e   :  { %v278_v55 = vrot.slane %v273_v49, %v1151_v36  ;;  %v282_v57 = vrot.slane %v273_v49, %v1158_v40  ;;  %v555_v6 = vsel %vm554_vm9, 1.0, %v1036_v37  ;;  %vm655_vm11 = vmand %vm1186_vm10, %vm1135_vm13  ;;  %v400_v51 = vpack.i.b16 %v385_v29, %v385_v29 }
  0x9f   :  { %v560_v13 = vrot.slane %v555_v6, %v1151_v36  ;;  %v564_v14 = vrot.slane %v555_v6, %v1158_v40  ;;  %v656_v26 = vsel %vm655_vm11, 1.0, %v1036_v37  ;;  %vm752_vm13 = vmand %vm1186_vm10, %vm1123_vm8  ;;  %v412_v6 = vrot.slane %v407_v52, %v1151_v36 }
  0xa0   :  { %v285_v4 = vpack.c.bf16 %v278_v55, %v278_v55  ;;  %v286_v7 = vpack.c.bf16 %v282_v57, %v282_v57  ;;  %v661_v42 = vrot.slane %v656_v26, %v1151_v36  ;;  %v665_v43 = vrot.slane %v656_v26, %v1158_v40  ;;  %vm849_vm8 = vmand %vm1186_vm10, %vm1154_vm3 }
  0xa1   :  { %287 = vrot.lane.b32.xlu0 %v1094_v21, %s1030_s2  ;;  %138 = vrot.lane.b32.xlu1 %v1098_v23, %s1029_s1  ;;  %v567_v32 = vpack.c.bf16 %v560_v13, %v560_v13  ;;  %v568_v33 = vpack.c.bf16 %v564_v14, %v564_v14  ;;  %v753_v48 = vsel %vm752_vm13, 1.0, %v1036_v37  ;;  %v405_v5 = vrot.slane %v400_v51, %v1151_v36 }
  0xa2   :  { %v300_v19 = vpack.i.b16 %v285_v4, %v285_v4  ;;  %v307_v25 = vpack.i.b16 %v286_v7, %v286_v7  ;;  %v668_v58 = vpack.c.bf16 %v661_v42, %v661_v42  ;;  %v669_v59 = vpack.c.bf16 %v665_v43, %v665_v43 }
  0xa3   :  { %v582_v54 = vpack.i.b16 %v567_v32, %v567_v32  ;;  %v589_v55 = vpack.i.b16 %v568_v33, %v568_v33  ;;  %v758_v60 = vrot.slane %v753_v48, %v1151_v36  ;;  %v499_v7 = vmul.bf16 %v497_v53, %v1094_v21 }
  0xa4   :  { %v305_v41 = vrot.slane %v300_v19, %v1151_v36  ;;  %v312_v47 = vrot.slane %v307_v25, %v1151_v36  ;;  %v683_v13 = vpack.i.b16 %v668_v58, %v668_v58  ;;  %vm573_vm3 = vcmask 1031168  }
  0xa5   :  { %387 = vrot.lane.b32.xlu0 %v1094_v21, %s1031_s11  ;;  %91 = vrot.lane.b32.xlu1 %v1098_v23, %s1028_s0  ;;  %v587_v8 = vrot.slane %v582_v54, %v1151_v36  ;;  %v765_v14 = vpack.c.bf16 %v758_v60, %v758_v60 }
  0xa6   :  { %v688_v26 = vrot.slane %v683_v13, %v1151_v36 }
  0xa9   :  { %569 = vrot.lane.b32.xlu0 %v1098_v23, %s1032_s12  ;;  %289 = vrot.lane.b32.xlu1 %v1098_v23, %s1030_s2 }
  0xad   :  { %670 = vrot.lane.b32.xlu0 %v1098_v23, %s1033_s13  ;;  %389 = vrot.lane.b32.xlu1 %v1098_v23, %s1031_s11 }
  0xb1   :  { %767 = vrot.lane.b32.xlu0 %v1098_v23, %s1034_s14  ;;  %571 = vrot.lane.b32.xlu1 %v1094_v21, %s1032_s12 }
  0xb5   :  { %864 = vrot.lane.b32.xlu0 %v1098_v23, %s1035_s15  ;;  %672 = vrot.lane.b32.xlu1 %v1094_v21, %s1033_s13 }
  0xb9   :  { %949 = vperm.xlu0 %1022, %v946_v24   ;;  %769 = vrot.lane.b32.xlu1 %v1094_v21, %s1034_s14 }
  0xbd   :  { %866 = vrot.lane.b32.xlu1 %v1094_v21, %s1035_s15  ;;  %v690_v21 = vpack.i.b16 %v669_v59, %v669_v59 }
 0x10f   :  { %v89_v1 = vpop.permute.xlu0 %88  ;;  %v137_v2 = vpop.permute.xlu1 %136 }
 0x113   :  { %v288_v16 = vpop.permute.xlu0 %287  ;;  %v139_v17 = vpop.permute.xlu1 %138 }
 0x114   :  { %v141_v22 = vsel %vm140_vm12, %v139_v17, %v137_v2  ;;  %v146_v24 = vsel %vm140_vm12, %v137_v2, %v139_v17 }
 0x115   :  { %v163_v27 = vmul.bf16 %v161_v9, %v141_v22  ;;  %v162_v28 = vmul.bf16 %v154_v10, %v146_v24  ;;  %v594_v9 = vrot.slane %v589_v55, %v1151_v36  ;;  %v850_v10 = vsel %vm849_vm8, 1.0, %v1036_v37 }
 0x116   :  { %v859_v19 = vrot.slane %v850_v10, %v1158_v40 }
 0x117   :  { %v388_v34 = vpop.permute.xlu0 %387  ;;  %985 = vmatprep.subr.msk.bf16.mxu0 %vm170_vm14, %v163_v27  ;;  %v92_v35 = vpop.permute.xlu1 %91  ;;  %v172_v38 = vsel %vm170_vm14, %v162_v28, 0  ;;  %v695_v27 = vrot.slane %v690_v21, %v1151_v36  ;;  %v780_v28 = vpack.i.b16 %v765_v14, %v765_v14 }
 0x118   :  { %v94_v44 = vsel %vm93_vm15, %v92_v35, %v89_v1  ;;  %v99_v45 = vsel %vm93_vm15, %v89_v1, %v92_v35  ;;  %178 = vmatpush1.bf16.msra.mxu0 %v172_v38  ;;  %v762_v1 = vrot.slane %v753_v48, %v1158_v40  ;;  %v992_v40 = vld [vmem:[%s1335_s3 + $0xc] sm:$0xf]  ;;  %v863_v38 = vpack.c.bf16 %v859_v19, %v859_v19 }
 0x119   :  { %v116_v49 = vmul.bf16 %v114_v18, %v94_v44  ;;  %v115_v50 = vmul.bf16 %v107_v20, %v99_v45  ;;  %v855_v18 = vrot.slane %v850_v10, %v1151_v36  ;;  %v506_v20 = vsel %vm170_vm14, %v498_v56, 0 }
 0x11a   :  { %v766_v37 = vpack.c.bf16 %v762_v1, %v762_v1  ;;  %v785_v43 = vrot.slane %v780_v28, %v1151_v36  ;;  %v884_v52 = vpack.i.b16 %v863_v38, %v863_v38 }
 0x11b   :  { %986 = vmatmul.mubr.msk.bf16.vlgmr.msra.gmra.mrb[0].mxu0 %vm166_vm0, %v984_v46  ;;  %987 = vmatprep.subr.msk.bf16.mxu1 %vm170_vm14, %v116_v49  ;;  %v290_v57 = vpop.permute.xlu1 %289  ;;  %v222_v30 = vsel %vm170_vm14, %v115_v50, 0  ;;  %v570_v2 = vpop.permute.xlu0 %569  ;;  %v862_v35 = vpack.c.bf16 %v855_v18, %v855_v18 }
 0x11c   :  { %v292_v61 = vsel %vm291_vm1, %v290_v57, %v288_v16  ;;  %v297_v23 = vsel %vm291_vm1, %v288_v16, %v290_v57  ;;  %228 = vmatpush1.bf16.msra.mxu1 %v222_v30  ;;  %358 = vmatprep.mubr.bf16.mxu0 %v1027_v0  ;;  %v787_v32 = vpack.i.b16 %v766_v37, %v766_v37  ;;  %v998_v57 = vld [vmem:[%s1335_s3 + $0x14] sm:$0xf] }
 0x11d   :  { %v313_v3 = vmul.bf16 %v305_v41, %v297_v23  ;;  %v314_v4 = vmul.bf16 %v312_v47, %v292_v61  ;;  %v995_v47 = vld [vmem:[%s1335_s3 + $0x10] sm:$0xf]  ;;  %v877_v51 = vpack.i.b16 %v862_v35, %v862_v35  ;;  %v889_v60 = vrot.slane %v884_v52, %v1151_v36 }
 0x11e   :  { %v792_v46 = vrot.slane %v787_v32, %v1151_v36 }
 0x11f   :  { %988 = vmatmul.mubr.msk.bf16.vlgmr.msra.gmra.mrb[0].mxu1 %vm166_vm0, %v117_v62  ;;  %990 = vmatprep.subr.msk.bf16.mxu0 %vm170_vm14, %v314_v4  ;;  %v390_v11 = vpop.permute.xlu1 %389  ;;  %v321_v12 = vsel %vm170_vm14, %v313_v3, 0  ;;  %v671_v22 = vpop.permute.xlu0 %670  ;;  %v882_v59 = vrot.slane %v877_v51, %v1151_v36  ;;  %v1001_v3 = vld [vmem:[%s1335_s3 + $0x18] sm:$0xf] }
 0x120   :  { %v392_v15 = vsel %vm391_vm2, %v390_v11, %v388_v34  ;;  %v397_v16 = vsel %vm391_vm2, %v388_v34, %v390_v11  ;;  %327 = vmatpush1.bf16.msra.mxu0 %v321_v12  ;;  %458 = vmatprep.mubr.bf16.mxu1 %v1027_v0 }
 0x121   :  { %v413_v63 = vmul.bf16 %v405_v5, %v397_v16  ;;  %v414_v17 = vmul.bf16 %v412_v6, %v392_v15  ;;  %996 = vmatprep.subr.msk.bf16.mxu0 %vm170_vm14, %v499_v7  ;;  %v1004_v6 = vld [vmem:[%s1335_s3 + $0x1c] sm:$0xf]  ;;  %v1007_v7 = vld [vmem:[%s1335_s3 + $0x20] sm:$0xf] }
 0x123   :  { %991 = vmatmul.mubr.msk.bf16.vlgmr.msra.gmra.mrb[4].mxu0 %vm166_vm0, %v989_v39  ;;  %993 = vmatprep.subr.msk.bf16.mxu1 %vm170_vm14, %v414_v17  ;;  %v572_v24 = vpop.permute.xlu1 %571  ;;  %v421_v25 = vsel %vm170_vm14, %v413_v63, 0  ;;  %v768_v48 = vpop.permute.xlu0 %767 }
 0x124   :  { %v574_v29 = vsel %vm573_vm3, %v570_v2, %v572_v24  ;;  %v579_v31 = vsel %vm573_vm3, %v572_v24, %v570_v2  ;;  %427 = vmatpush1.bf16.msra.mxu1 %v421_v25  ;;  %512 = vmatpush1.bf16.msra.mxu0 %v506_v20 }
 0x125   :  { %v595_v33 = vmul.bf16 %v587_v8, %v574_v29  ;;  %v596_v34 = vmul.bf16 %v594_v9, %v579_v31  ;;  %543 = vmatprep.mubr.bf16.mxu0 %v1027_v0 }
 0x127   :  { %994 = vmatmul.mubr.msk.bf16.vlgmr.msra.gmra.mrb[4].mxu1 %vm166_vm0, %v992_v40  ;;  %999 = vmatprep.subr.msk.bf16.mxu1 %vm170_vm14, %v596_v34  ;;  %v673_v41 = vpop.permute.xlu1 %672  ;;  %v603_v42 = vsel %vm170_vm14, %v595_v33, 0  ;;  %v865_v61 = vpop.permute.xlu0 %864 }
 0x128   :  { %v675_v44 = vsel %vm674_vm4, %v671_v22, %v673_v41  ;;  %v680_v45 = vsel %vm674_vm4, %v673_v41, %v671_v22  ;;  %609 = vmatpush1.bf16.msra.mxu1 %v603_v42  ;;  %640 = vmatprep.mubr.bf16.mxu1 %v1027_v0 }
 0x129   :  { %v696_v49 = vmul.bf16 %v688_v26, %v675_v44  ;;  %v697_v50 = vmul.bf16 %v695_v27, %v680_v45 }
 0x12b   :  { %v770_v53 = vpop.permute.xlu1 %769  ;;  %997 = vmatmul.mubr.msk.bf16.vlgmr.msra.gmra.mrb[8].mxu0 %vm166_vm0, %v995_v47  ;;  %1002 = vmatprep.subr.msk.bf16.mxu0 %vm170_vm14, %v697_v50  ;;  %v704_v54 = vsel %vm170_vm14, %v696_v49, 0 }
 0x12c   :  { %v772_v55 = vsel %vm771_vm5, %v768_v48, %v770_v53  ;;  %v777_v56 = vsel %vm771_vm5, %v770_v53, %v768_v48  ;;  %710 = vmatpush1.bf16.msra.mxu0 %v704_v54  ;;  %741 = vmatprep.mubr.bf16.mxu0 %v1027_v0 }
 0x12d   :  { %v793_v30 = vmul.bf16 %v785_v43, %v772_v55  ;;  %v794_v58 = vmul.bf16 %v792_v46, %v777_v56 }
 0x12f   :  { %1000 = vmatmul.mubr.msk.bf16.vlgmr.msra.gmra.mrb[8].mxu1 %vm166_vm0, %v998_v57  ;;  %1005 = vmatprep.subr.msk.bf16.mxu1 %vm170_vm14, %v794_v58  ;;  %v867_v23 = vpop.permute.xlu1 %866  ;;  %v801_v62 = vsel %vm170_vm14, %v793_v30, 0 }
 0x130   :  { %v869_v1 = vsel %vm868_vm6, %v865_v61, %v867_v23  ;;  %v874_v2 = vsel %vm868_vm6, %v867_v23, %v865_v61  ;;  %807 = vmatpush1.bf16.msra.mxu1 %v801_v62  ;;  %838 = vmatprep.mubr.bf16.mxu1 %v1027_v0 }
 0x131   :  { %v890_v4 = vmul.bf16 %v882_v59, %v869_v1  ;;  %v891_v5 = vmul.bf16 %v889_v60, %v874_v2 }
 0x133   :  { %1003 = vmatmul.mubr.msk.bf16.vlgmr.msra.gmra.mrb[12].mxu0 %vm166_vm0, %v1001_v3  ;;  %1008 = vmatprep.subr.msk.bf16.mxu0 %vm170_vm14, %v891_v5  ;;  %v898_v36 = vsel %vm170_vm14, %v890_v4, 0 }
 0x134   :  { %904 = vmatpush1.bf16.msra.mxu0 %v898_v36  ;;  %935 = vmatprep.mubr.bf16.mxu0 %v1027_v0 }
 0x137   :  { %1006 = vmatmul.mubr.msk.bf16.vlgmr.msra.gmra.mrb[12].mxu1 %vm166_vm0, %v1004_v6 }
 0x138   :  { %v950_v30 = vpop.permute.xlu0 %949 }
 0x13b   :  { %1009 = vmatmul.mubr.msk.bf16.vlgmr.msra.gmra.mrb[16].mxu0 %vm166_vm0, %v1007_v7 }
 0x1ee   :  { %v211_v8 = vpop.f32.mrb[0].mxu0 }
 0x1ef   :  { %v213_v9 = vpop.f32.mrb[1].mxu0 }
 0x1f0   :  { %v215_v10 = vpop.f32.mrb[2].mxu0 }
 0x1f1   :  { %v216_v11 = vpop.f32.mrb[3].mxu0 }
 0x1f2   :  { %v261_v12 = vpop.f32.mrb[0].mxu1 }
 0x1f3   :  { %v262_v13 = vadd.f32 %v261_v12, %v211_v8  ;;  %v263_v21 = vpop.f32.mrb[1].mxu1 }
 0x1f4   :  { %v264_v14 = vadd.f32 %v263_v21, %v213_v9  ;;  %v265_v15 = vpop.f32.mrb[2].mxu1 }
 0x1f5   :  { %v266_v16 = vpop.f32.mrb[3].mxu1 }
 0x1f6   :  { %v360_v39 = vpop.f32.mrb[4].mxu0 }
 0x1f7   :  { %v367_v0 = vadd.f32 %v360_v39, %v262_v13  ;;  %v362_v37 = vpop.f32.mrb[5].mxu0 }
 0x1f8   :  { %v368_v63 = vadd.f32 %v362_v37, %v264_v14  ;;  %v364_v17 = vpop.f32.mrb[6].mxu0 }
 0x1f9   :  { %v365_v18 = vpop.f32.mrb[7].mxu0 }
 0x1fa   :  { %v460_v19 = vpop.f32.mrb[4].mxu1 }
 0x1fb   :  { %v467_v20 = vadd.f32 %v460_v19, %v367_v0  ;;  %v462_v22 = vpop.f32.mrb[5].mxu1 }
 0x1fc   :  { %v468_v24 = vadd.f32 %v462_v22, %v368_v63  ;;  %v464_v25 = vpop.f32.mrb[6].mxu1 }
 0x1fd   :  { %v465_v26 = vpop.f32.mrb[7].mxu1 }
 0x1fe   :  { %v545_v27 = vpop.f32.mrb[8].mxu0 }
 0x1ff   :  { %v552_v28 = vadd.f32 %v545_v27, %v467_v20  ;;  %v547_v29 = vpop.f32.mrb[9].mxu0 }
 0x200   :  { %v553_v31 = vadd.f32 %v547_v29, %v468_v24  ;;  %v549_v40 = vpop.f32.mrb[10].mxu0 }
 0x201   :  { %v550_v32 = vpop.f32.mrb[11].mxu0 }
 0x202   :  { %v642_v33 = vpop.f32.mrb[8].mxu1 }
 0x203   :  { %v649_v34 = vadd.f32 %v642_v33, %v552_v28  ;;  %v644_v35 = vpop.f32.mrb[9].mxu1 }
 0x204   :  { %v650_v38 = vadd.f32 %v644_v35, %v553_v31  ;;  %v646_v41 = vpop.f32.mrb[10].mxu1 }
 0x205   :  { %v647_v42 = vpop.f32.mrb[11].mxu1 }
 0x206   :  { %v743_v43 = vpop.f32.mrb[12].mxu0 }
 0x207   :  { %v750_v44 = vadd.f32 %v743_v43, %v649_v34  ;;  %v745_v45 = vpop.f32.mrb[13].mxu0 }
 0x208   :  { %v751_v46 = vadd.f32 %v745_v45, %v650_v38  ;;  %v747_v47 = vpop.f32.mrb[14].mxu0 }
 0x209   :  { %v748_v48 = vpop.f32.mrb[15].mxu0 }
 0x20a   :  { %v840_v49 = vpop.f32.mrb[12].mxu1 }
 0x20b   :  { %v847_v50 = vadd.f32 %v840_v49, %v750_v44  ;;  %v842_v51 = vpop.f32.mrb[13].mxu1 }
 0x20c   :  { %v848_v52 = vadd.f32 %v842_v51, %v751_v46  ;;  %v844_v53 = vpop.f32.mrb[14].mxu1 }
 0x20d   :  { %v845_v54 = vpop.f32.mrb[15].mxu1 }
 0x20e   :  { %v937_v55 = vpop.f32.mrb[16].mxu0 }
 0x20f   :  { %v944_v56 = vadd.f32 %v937_v55, %v847_v50  ;;  %v939_v57 = vpop.f32.mrb[17].mxu0 }
 0x210   :  { %v945_v58 = vadd.f32 %v939_v57, %v848_v52  ;;  %v941_v59 = vpop.f32.mrb[18].mxu0 }
 0x211   :  { %v952_v60 = vadd.f32 %v950_v30, %v944_v56  ;;  %v942_v61 = vpop.f32.mrb[19].mxu0 }
 0x212   :  { %v953_v23 = vadd.f32 %v950_v30, %v945_v58 }
 0x213   :  { %v966_v62 = vmul.f32 %v952_v60, %v952_v60 }
 0x214   :  { %v1011_v1 = vpack.c.bf16 %v953_v23, %v952_v60  ;;  %v963_v2 = vadd.f32 %v953_v23, %v952_v60  ;;  %v967_v3 = vmul.f32 %v953_v23, %v953_v23 }
 0x216   :  { %962 = vst [vmem:[%s1336_s7] sm:$0xff] %v1011_v1  ;;  %964 = vadd.xlane.f32.xlu1 %v963_v2  ;;  %v968_v4 = vadd.f32 %v967_v3, %v966_v62 }
 0x218   :  { %969 = vadd.xlane.f32.xlu0 %v968_v4 }
 0x2a3   :  { %v965_v5 = vpop.xlane.xlu1 %964 }
 0x2a5   :  { %v970_v36 = vpop.xlane.xlu0 %969 }
 0x2a6   :  { %v972_v6 = vsel %vm971_vm7, %v965_v5, %v970_v36 }
 0x2a7   :  { %973 = vst.msk [vmem:[%s1337_s8] sm:$0xff] %vm391_vm2, %v972_v6 }

</bundles_post_ra>
